<compile_context>
chip_gen: v7x
topology: tpu7x:2x2x1
jax: 0.10.0
libtpu: 0.0.40
codegen_flags: <defaults>
</compile_context>

<pallas_src>
import functools
import math
from dataclasses import dataclass

import jax
import jax.numpy as jnp
from jax.experimental import pallas as pl
from jax.experimental.pallas import tpu as pltpu


@dataclass
class ModelArgs:
    dim: int = 512
    n_layers: int = 8
    n_heads: int = 8
    vocab_size: int = -1
    multiple_of: int = 256
    norm_eps: float = 1e-5
    max_batch_size: int = 32
    max_seq_len: int = 1024


# ----------------------------------------------------------------------------
# Fused layer-stack kernel (one pallas_call for all TransformerBlocks)
# ----------------------------------------------------------------------------

def _stack_kernel(x_ref, rot_ref, anw_ref, fnw_ref, wqkv_ref, wo_ref,
                  w13_ref, w2_ref, o_ref, h_sc, attn_sc,
                  *, eps, n_heads, head_dim):
    """One grid step == one TransformerBlock; h carried in VMEM scratch."""
    f32 = jnp.float32
    bf16 = jnp.bfloat16
    layer = pl.program_id(0)

    # ---- residual-stream carry: init from x at layer 0 ----
    @pl.when(layer == 0)
    def _():
        h_sc[...] = x_ref[...]

    h = h_sc[...]                                         # (S, D) f32
    S, D = h.shape

    # ---- attention_norm (RMSNorm) ----
    xn = h * jax.lax.rsqrt(jnp.mean(h * h, axis=-1, keepdims=True) + eps)
    xn = xn * anw_ref[...]                                # (1, D) broadcast

    # ---- fused QKV projection: (S, D) @ (D, 3D) -> (S, 3D) ----
    # (score scale 1/sqrt(head_dim) already folded into the Q columns)
    qkv = jnp.dot(xn.astype(bf16), wqkv_ref[...], preferred_element_type=f32)
    rot = rot_ref[...]
    q = qkv[:, 0 * D:1 * D] * rot    # degenerate reference RoPE: x*(fl+fr)
    k = qkv[:, 1 * D:2 * D] * rot
    v = qkv[:, 2 * D:3 * D]

    # ---- causal mask built in-kernel (no HBM mask DMA) ----
    row = jax.lax.broadcasted_iota(jnp.int32, (S, S), 0)
    col = jax.lax.broadcasted_iota(jnp.int32, (S, S), 1)
    neg = jnp.float32(-1e30)

    # ---- per-head attention; head outputs land in attn_sc at lane offsets ----
    for hh in range(n_heads):
        sl = slice(hh * head_dim, (hh + 1) * head_dim)
        qh = q[:, sl].astype(bf16)
        kh = k[:, sl].astype(bf16)
        vh = v[:, sl].astype(bf16)
        s = jax.lax.dot_general(qh, kh, (((1,), (1,)), ((), ())),
                                preferred_element_type=f32)   # (S, S)
        s = jnp.where(col <= row, s, neg)
        m = jnp.max(s, axis=-1, keepdims=True)
        p = jnp.exp(s - m)
        p = p * pl.reciprocal(jnp.sum(p, axis=-1, keepdims=True), approx=True)
        oh = jnp.dot(p.astype(bf16), vh, preferred_element_type=f32)
        attn_sc[:, sl] = oh.astype(bf16)

    # ---- single K=D output projection + residual 1 ----
    proj = jnp.dot(attn_sc[...], wo_ref[...], preferred_element_type=f32)
    h1 = h + proj

    # ---- ffn_norm (RMSNorm) + SwiGLU FFN (merged w1/w3) + residual 2 ----
    hn = h1 * jax.lax.rsqrt(jnp.mean(h1 * h1, axis=-1, keepdims=True) + eps)
    hn = (hn * fnw_ref[...]).astype(bf16)
    a13 = jnp.dot(hn, w13_ref[...], preferred_element_type=f32)   # (S, 2*Hd)
    hd2 = a13.shape[1]
    a1 = a13[:, :hd2 // 2]
    a3 = a13[:, hd2 // 2:]
    g = (a1 * jax.nn.sigmoid(a1)) * a3
    ffn = jnp.dot(g.astype(bf16), w2_ref[...], preferred_element_type=f32)
    h_new = h1 + ffn

    h_sc[...] = h_new
    @pl.when(layer == pl.num_programs(0) - 1)
    def _():
        o_ref[...] = h_new


def transformer_stack(x, packed, rot, *, n_heads, head_dim, eps):
    """x: (S, D) f32; packed: stacked/merged/bf16 weights; -> (S, D) f32."""
    S, D = x.shape
    L = packed["wqkv"].shape[0]
    hd2 = packed["w13"].shape[2]          # 2 * Hd
    hdim = packed["w2"].shape[1]          # Hd

    def const_spec(shape):
        return pl.BlockSpec(shape, lambda l, _n=len(shape): (0,) * _n)

    def layer_spec(shape):                # shape excludes the layer axis
        nd = len(shape)
        return pl.BlockSpec((None,) + shape, lambda l, _n=nd: (l,) + (0,) * _n)

    # ---- derive VMEM budget from actual shapes (safe on v5e/v6e/v7x) ----
    def nbytes(a):
        return int(a.size) * a.dtype.itemsize
    per_layer_w = sum(nbytes(packed[k]) // L for k in
                      ("attention_norm", "ffn_norm", "wqkv", "wo", "w13", "w2"))
    resident = 3 * S * D * 4                     # x, rot, output block
    scratch = S * D * 4 + S * D * 2              # h carry (f32) + attn (bf16)
    vmem_limit = 2 * (per_layer_w + resident) + scratch + (16 << 20)
    vmem_limit = int(min(max(vmem_limit, 32 << 20), 64 << 20))

    kern = functools.partial(_stack_kernel, eps=eps,
                             n_heads=n_heads, head_dim=head_dim)
    return pl.pallas_call(
        kern,
        out_shape=jax.ShapeDtypeStruct((S, D), jnp.float32),
        grid_spec=pltpu.PrefetchScalarGridSpec(
            num_scalar_prefetch=0,
            grid=(L,),
            in_specs=[const_spec((S, D)),           # x (grid-invariant)
                      const_spec((S, D)),           # rot (grid-invariant)
                      layer_spec((1, D)),           # attention_norm weight
                      layer_spec((1, D)),           # ffn_norm weight
                      layer_spec((D, 3 * D)),       # wqkv  (K,N) bf16
                      layer_spec((D, D)),           # wo    (K,N) bf16
                      layer_spec((D, hd2)),         # w1|w3 (K,N) bf16
                      layer_spec((hdim, D))],       # w2    (K,N) bf16
            out_specs=const_spec((S, D)),
            scratch_shapes=[pltpu.VMEM((S, D), jnp.float32),     # h carry
                            pltpu.VMEM((S, D), jnp.bfloat16)]),  # attn concat
        compiler_params=pltpu.CompilerParams(
            dimension_semantics=("arbitrary",),
            vmem_limit_bytes=vmem_limit),
    )(x, rot, packed["attention_norm"], packed["ffn_norm"],
      packed["wqkv"], packed["wo"], packed["w13"], packed["w2"])


# ----------------------------------------------------------------------------
# Wrapper glue (plain JAX: RoPE/rot precompute, parameter packing)
# ----------------------------------------------------------------------------

def transformer_block_forward(params, packed, x, start_pos, args):
    """x: (bsz, seqlen, dim). Prefill path: bsz == 1, start_pos == 0."""
    bsz, S, D = x.shape
    assert bsz == 1 and start_pos == 0
    head_dim = D // args.n_heads

    fc = params["freqs_cos"][start_pos:start_pos + S]
    fs = params["freqs_sin"][start_pos:start_pos + S]
    # fl = [c0,c0,c1,c1,...], fr = [-s0,s0,-s1,s1,...]; reference RoPE
    # degenerates to x * (fl + fr) -> one rot tensor serves both Q and K
    # (the 1/sqrt(head_dim) score scale is folded into wqkv's Q columns).
    fl = jnp.stack([fc, fc], axis=-1).reshape(S, head_dim)
    fr = jnp.stack([-fs, fs], axis=-1).reshape(S, head_dim)
    rot = jnp.tile(fl + fr, (1, args.n_heads))             # (S, D)

    h = transformer_stack(x[0], packed, rot, n_heads=args.n_heads,
                          head_dim=head_dim, eps=args.norm_eps)
    return h[None]


def init_params(key, args):
    head_dim = args.dim // args.n_heads
    hidden_dim = int(2 * (4 * args.dim) / 3)
    hidden_dim = args.multiple_of * ((hidden_dim + args.multiple_of - 1)
                                     // args.multiple_of)

    def w(k, shape):
        return 0.02 * jax.random.normal(k, shape, jnp.float32)

    keys = jax.random.split(key, args.n_layers)
    layers = []
    for l in range(args.n_layers):
        lk = jax.random.split(keys[l], 7)
        layers.append({
            "wq": w(lk[0], (args.dim, args.dim)),        # torch layout (out,in)
            "wk": w(lk[1], (args.dim, args.dim)),
            "wv": w(lk[2], (args.dim, args.dim)),
            "wo": w(lk[3], (args.dim, args.dim)),
            "w1": w(lk[4], (hidden_dim, args.dim)),
            "w2": w(lk[5], (args.dim, hidden_dim)),
            "w3": w(lk[6], (hidden_dim, args.dim)),
            "attention_norm": jnp.ones((args.dim,), jnp.float32),
            "ffn_norm": jnp.ones((args.dim,), jnp.float32),
        })

    # precompute_freqs_cis(head_dim, max_seq_len * 2)
    freqs = 1.0 / (10000.0 ** (jnp.arange(0, head_dim, 2)[: head_dim // 2]
                               .astype(jnp.float32) / head_dim))
    t = jnp.arange(args.max_seq_len * 2, dtype=jnp.float32)
    f = jnp.outer(t, freqs)
    return {"layers": layers,
            "freqs_cos": jnp.cos(f),
            "freqs_sin": jnp.sin(f)}


def pack_for_kernel(params, args):
    """Stack per-layer weights, merge QKV / w1|w3, pre-transpose to (K, N),
    fold the attention score scale into the Q columns, cast to bf16."""
    head_dim = args.dim // args.n_heads
    scale = 1.0 / math.sqrt(head_dim)
    bf16 = jnp.bfloat16
    wqkv, wo, w13, w2, anw, fnw = [], [], [], [], [], []
    for lp in params["layers"]:
        wqkv.append(jnp.concatenate([lp["wq"].T * scale, lp["wk"].T,
                                     lp["wv"].T], axis=1).astype(bf16))
        wo.append(lp["wo"].T.astype(bf16))
        w13.append(jnp.concatenate([lp["w1"].T, lp["w3"].T],
                                   axis=1).astype(bf16))
        w2.append(lp["w2"].T.astype(bf16))
        anw.append(lp["attention_norm"].reshape(1, -1))
        fnw.append(lp["ffn_norm"].reshape(1, -1))
    return {"wqkv": jnp.stack(wqkv),             # (L, D, 3D)   bf16
            "wo": jnp.stack(wo),                 # (L, D, D)    bf16
            "w13": jnp.stack(w13),               # (L, D, 2Hd)  bf16
            "w2": jnp.stack(w2),                 # (L, Hd, D)   bf16
            "attention_norm": jnp.stack(anw),    # (L, 1, D)    f32
            "ffn_norm": jnp.stack(fnw)}          # (L, 1, D)    f32


# ----------------------------------------------------------------------------
# Pure-JAX reference (mirrors the torch module, incl. degenerate RoPE), f32
# ----------------------------------------------------------------------------

def _ref_block_forward(params, x, start_pos, args):
    bsz, S, D = x.shape
    head_dim = D // args.n_heads
    eps = args.norm_eps
    fc = params["freqs_cos"][start_pos:start_pos + S]
    fs = params["freqs_sin"][start_pos:start_pos + S]
    fl = jnp.stack([fc, fc], -1).reshape(S, 1, head_dim)
    fr = jnp.stack([-fs, fs], -1).reshape(S, 1, head_dim)
    mask = (jnp.triu(jnp.full((S, S), float("-inf"), jnp.float32),
                     k=start_pos + 1)
            if S > 1 else jnp.zeros((S, S), jnp.float32))

    def rms(v, wgt):
        return v * jax.lax.rsqrt(jnp.mean(v * v, -1, keepdims=True) + eps) * wgt

    h = x[0]
    for lp in params["layers"]:
        xn = rms(h, lp["attention_norm"])
        xq = (xn @ lp["wq"].T).reshape(S, args.n_heads, head_dim)
        xk = (xn @ lp["wk"].T).reshape(S, args.n_heads, head_dim)
        xv = (xn @ lp["wv"].T).reshape(S, args.n_heads, head_dim)
        xq = xq * fl + xq * fr          # reference slice(0,2): xq_ == xq
        xk = xk * fl + xk * fr
        q, k, v = (xq.transpose(1, 0, 2), xk.transpose(1, 0, 2),
                   xv.transpose(1, 0, 2))
        s = jnp.einsum("hqd,hkd->hqk", q, k) / math.sqrt(head_dim) + mask
        p = jax.nn.softmax(s, axis=-1)
        o = jnp.einsum("hqk,hkd->hqd", p, v).transpose(1, 0, 2).reshape(S, D)
        h = h + o @ lp["wo"].T
        hn = rms(h, lp["ffn_norm"])
        g = jax.nn.silu(hn @ lp["w1"].T) * (hn @ lp["w3"].T)
        h = h + g @ lp["w2"].T
    return h[None]


if __name__ == "__main__":
    args = ModelArgs(dim=128, n_layers=4, n_heads=4, vocab_size=-1,
                     multiple_of=128, norm_eps=1e-5,
                     max_batch_size=1, max_seq_len=32)

    key = jax.random.PRNGKey(0)
    pkey, xkey = jax.random.split(key)
    params = init_params(pkey, args)
    packed = pack_for_kernel(params, args)

    seqlen = 8
    x = jax.random.normal(xkey, (1, seqlen, args.dim), jnp.float32)

    out = transformer_block_forward(params, packed, x, start_pos=0, args=args)
    out = jax.block_until_ready(out)
    assert out.shape == (1, seqlen, args.dim)
    assert bool(jnp.all(jnp.isfinite(out)))

    ref = _ref_block_forward(params, x, start_pos=0, args=args)
    err = float(jnp.max(jnp.abs(out - ref)))
    # bf16 MXU operands vs f32 reference: allow ~2e-2 combined tolerance
    assert bool(jnp.allclose(out, ref, rtol=2e-2, atol=2e-2)), (
        "max abs err = %f" % err)
    print("KERNEL_OK")
</pallas_src>

<mosaic_0001>
module attributes {stable_mosaic.version = 11 : i64} {
  func.func @_stack_kernel(%arg0: i32, %arg1: memref<8x128xf32, #tpu.memory_space<vmem>>, %arg2: memref<8x128xf32, #tpu.memory_space<vmem>>, %arg3: memref<1x1x128xf32, #tpu.memory_space<vmem>>, %arg4: memref<1x1x128xf32, #tpu.memory_space<vmem>>, %arg5: memref<1x128x384xbf16, #tpu.memory_space<vmem>>, %arg6: memref<1x128x128xbf16, #tpu.memory_space<vmem>>, %arg7: memref<1x128x768xbf16, #tpu.memory_space<vmem>>, %arg8: memref<1x384x128xbf16, #tpu.memory_space<vmem>>, %arg9: memref<8x128xf32, #tpu.memory_space<vmem>>, %arg10: memref<8x128xf32, #tpu.memory_space<vmem>>, %arg11: memref<8x128xbf16, #tpu.memory_space<vmem>>) attributes {dimension_semantics = [#tpu.dimension_semantics<arbitrary>], iteration_bounds = array<i64: 4>, scalar_prefetch = 0 : i64, scratch_operands = 2 : i64, tpu.core_type = #tpu.core_type<tc>, window_params = [{pipeline_mode = #tpu.pipeline_mode<synchronous>, transform_indices = @transform_0, window_bounds = array<i64: 8, 128>}, {pipeline_mode = #tpu.pipeline_mode<synchronous>, transform_indices = @transform_1, window_bounds = array<i64: 8, 128>}, {transform_indices = @transform_2, window_bounds = array<i64: 1, 1, 128>}, {transform_indices = @transform_3, window_bounds = array<i64: 1, 1, 128>}, {transform_indices = @transform_4, window_bounds = array<i64: 1, 128, 384>}, {transform_indices = @transform_5, window_bounds = array<i64: 1, 128, 128>}, {transform_indices = @transform_6, window_bounds = array<i64: 1, 128, 768>}, {transform_indices = @transform_7, window_bounds = array<i64: 1, 384, 128>}, {pipeline_mode = #tpu.pipeline_mode<synchronous>, transform_indices = @transform_8, window_bounds = array<i64: 8, 128>}]} {
    %c0_i32 = arith.constant 0 : i32
    %0 = arith.cmpi eq, %arg0, %c0_i32 : i32
    %1 = arith.extui %0 : i1 to i32
    %c0_i32_0 = arith.constant 0 : i32
    %2 = arith.cmpi ne, %1, %c0_i32_0 : i32
    scf.if %2 {
      %c0_62 = arith.constant 0 : index
      %c0_63 = arith.constant 0 : index
      %167 = vector.load %arg1[%c0_62, %c0_63] : memref<8x128xf32, #tpu.memory_space<vmem>>, vector<8x128xf32>
      %c0_64 = arith.constant 0 : index
      %c0_65 = arith.constant 0 : index
      %168 = vector.load %arg10[%c0_64, %c0_65] : memref<8x128xf32, #tpu.memory_space<vmem>>, vector<8x128xf32>
      tpu.vector_store %arg10[%c0_64, %c0_65], %167 {strides = array<i32>} : memref<8x128xf32, #tpu.memory_space<vmem>>, vector<8x128xf32>,
    } else {
    }
    %c0 = arith.constant 0 : index
    %c0_1 = arith.constant 0 : index
    %3 = vector.load %arg10[%c0, %c0_1] : memref<8x128xf32, #tpu.memory_space<vmem>>, vector<8x128xf32>
    %4 = arith.mulf %3, %3 : vector<8x128xf32>
    %cst = arith.constant dense<0.000000e+00> : vector<8xf32>
    %5 = vector.multi_reduction <add>, %4, %cst [1] : vector<8x128xf32> to vector<8xf32>
    %6 = vector.shape_cast %5 : vector<8xf32> to vector<8x1xf32>
    %cst_2 = arith.constant 1.280000e+02 : f32
    %7 = vector.broadcast %cst_2 : f32 to vector<8x1xf32>
    %8 = arith.divf %6, %7 : vector<8x1xf32>
    %cst_3 = arith.constant 9.99999974E-6 : f32
    %9 = vector.broadcast %cst_3 : f32 to vector<8x1xf32>
    %10 = arith.addf %8, %9 : vector<8x1xf32>
    %11 = math.rsqrt %10 : vector<8x1xf32>
    %12 = vector.broadcast %11 : vector<8x1xf32> to vector<8x128xf32>
    %13 = arith.mulf %3, %12 : vector<8x128xf32>
    %c0_4 = arith.constant 0 : index
    %c0_5 = arith.constant 0 : index
    %c0_6 = arith.constant 0 : index
    %14 = vector.load %arg3[%c0_4, %c0_5, %c0_6] : memref<1x1x128xf32, #tpu.memory_space<vmem>>, vector<1x1x128xf32>
    %15 = vector.shape_cast %14 : vector<1x1x128xf32> to vector<1x128xf32>
    %16 = vector.broadcast %15 : vector<1x128xf32> to vector<8x128xf32>
    %17 = arith.mulf %13, %16 : vector<8x128xf32>
    %18 = arith.truncf %17 : vector<8x128xf32> to vector<8x128xbf16>
    %c0_7 = arith.constant 0 : index
    %c0_8 = arith.constant 0 : index
    %c0_9 = arith.constant 0 : index
    %19 = vector.load %arg5[%c0_7, %c0_8, %c0_9] : memref<1x128x384xbf16, #tpu.memory_space<vmem>>, vector<1x128x384xbf16>
    %20 = vector.shape_cast %19 : vector<1x128x384xbf16> to vector<128x384xbf16>
    %cst_10 = arith.constant dense<0.000000e+00> : vector<8x384xf32>
    %21 = tpu.matmul %18, %20, %cst_10 {dimension_numbers = #tpu.dot_dimension_numbers<[1], [0], [0], [1], [0, 0, 1, 1], [], []>} : vector<8x128xbf16>, vector<128x384xbf16>, vector<8x384xf32> -> vector<8x384xf32>
    %c0_11 = arith.constant 0 : index
    %c0_12 = arith.constant 0 : index
    %22 = vector.load %arg2[%c0_11, %c0_12] : memref<8x128xf32, #tpu.memory_space<vmem>>, vector<8x128xf32>
    %23 = vector.extract_strided_slice %21 {offsets = [0, 0], sizes = [8, 128], strides = [1, 1]} : vector<8x384xf32> to vector<8x128xf32>
    %24 = arith.mulf %23, %22 : vector<8x128xf32>
    %25 = vector.extract_strided_slice %21 {offsets = [0, 128], sizes = [8, 128], strides = [1, 1]} : vector<8x384xf32> to vector<8x128xf32>
    %26 = arith.mulf %25, %22 : vector<8x128xf32>
    %27 = vector.extract_strided_slice %21 {offsets = [0, 256], sizes = [8, 128], strides = [1, 1]} : vector<8x384xf32> to vector<8x128xf32>
    %28 = tpu.iota {dimensions = array<i32: 0>} : vector<8x8xi32>
    %29 = tpu.iota {dimensions = array<i32: 1>} : vector<8x8xi32>
    %30 = vector.extract_strided_slice %24 {offsets = [0, 0], sizes = [8, 32], strides = [1, 1]} : vector<8x128xf32> to vector<8x32xf32>
    %31 = arith.truncf %30 : vector<8x32xf32> to vector<8x32xbf16>
    %32 = vector.extract_strided_slice %26 {offsets = [0, 0], sizes = [8, 32], strides = [1, 1]} : vector<8x128xf32> to vector<8x32xf32>
    %33 = arith.truncf %32 : vector<8x32xf32> to vector<8x32xbf16>
    %34 = vector.extract_strided_slice %27 {offsets = [0, 0], sizes = [8, 32], strides = [1, 1]} : vector<8x128xf32> to vector<8x32xf32>
    %35 = arith.truncf %34 : vector<8x32xf32> to vector<8x32xbf16>
    %cst_13 = arith.constant dense<0.000000e+00> : vector<8x8xf32>
    %36 = tpu.matmul %31, %33, %cst_13 {dimension_numbers = #tpu.dot_dimension_numbers<[1], [1], [0], [0], [0, 0, 1, 0], [], []>} : vector<8x32xbf16>, vector<8x32xbf16>, vector<8x8xf32> -> vector<8x8xf32>
    %37 = arith.cmpi sle, %29, %28 : vector<8x8xi32>
    %cst_14 = arith.constant -1.000000e+30 : f32
    %38 = vector.broadcast %cst_14 : f32 to vector<8x8xf32>
    %39 = arith.select %37, %36, %38 : vector<8x8xi1>, vector<8x8xf32>
    %cst_15 = arith.constant dense<0xFF800000> : vector<8xf32>
    %40 = vector.multi_reduction <maximumf>, %39, %cst_15 [1] : vector<8x8xf32> to vector<8xf32>
    %41 = vector.shape_cast %40 : vector<8xf32> to vector<8x1xf32>
    %42 = vector.broadcast %41 : vector<8x1xf32> to vector<8x8xf32>
    %43 = arith.subf %39, %42 : vector<8x8xf32>
    %44 = math.exp %43 : vector<8x8xf32>
    %cst_16 = arith.constant dense<0.000000e+00> : vector<8xf32>
    %45 = vector.multi_reduction <add>, %44, %cst_16 [1] : vector<8x8xf32> to vector<8xf32>
    %46 = vector.shape_cast %45 : vector<8xf32> to vector<8x1xf32>
    %47 = tpu.reciprocal %46 {approx = true} : vector<8x1xf32> -> vector<8x1xf32>
    %48 = vector.broadcast %47 : vector<8x1xf32> to vector<8x8xf32>
    %49 = arith.mulf %44, %48 : vector<8x8xf32>
    %50 = arith.truncf %49 : vector<8x8xf32> to vector<8x8xbf16>
    %cst_17 = arith.constant dense<0.000000e+00> : vector<8x32xf32>
    %51 = tpu.matmul %50, %35, %cst_17 {dimension_numbers = #tpu.dot_dimension_numbers<[1], [0], [0], [1], [0, 0, 1, 1], [], []>} : vector<8x8xbf16>, vector<8x32xbf16>, vector<8x32xf32> -> vector<8x32xf32>
    %52 = arith.truncf %51 : vector<8x32xf32> to vector<8x32xbf16>
    %c0_18 = arith.constant 0 : index
    %c0_19 = arith.constant 0 : index
    %53 = vector.load %arg11[%c0_18, %c0_19] : memref<8x128xbf16, #tpu.memory_space<vmem>>, vector<8x32xbf16>
    tpu.vector_store %arg11[%c0_18, %c0_19], %52 {strides = array<i32>} : memref<8x128xbf16, #tpu.memory_space<vmem>>, vector<8x32xbf16>,
    %54 = vector.extract_strided_slice %24 {offsets = [0, 32], sizes = [8, 32], strides = [1, 1]} : vector<8x128xf32> to vector<8x32xf32>
    %55 = arith.truncf %54 : vector<8x32xf32> to vector<8x32xbf16>
    %56 = vector.extract_strided_slice %26 {offsets = [0, 32], sizes = [8, 32], strides = [1, 1]} : vector<8x128xf32> to vector<8x32xf32>
    %57 = arith.truncf %56 : vector<8x32xf32> to vector<8x32xbf16>
    %58 = vector.extract_strided_slice %27 {offsets = [0, 32], sizes = [8, 32], strides = [1, 1]} : vector<8x128xf32> to vector<8x32xf32>
    %59 = arith.truncf %58 : vector<8x32xf32> to vector<8x32xbf16>
    %cst_20 = arith.constant dense<0.000000e+00> : vector<8x8xf32>
    %60 = tpu.matmul %55, %57, %cst_20 {dimension_numbers = #tpu.dot_dimension_numbers<[1], [1], [0], [0], [0, 0, 1, 0], [], []>} : vector<8x32xbf16>, vector<8x32xbf16>, vector<8x8xf32> -> vector<8x8xf32>
    %61 = arith.cmpi sle, %29, %28 : vector<8x8xi32>
    %cst_21 = arith.constant -1.000000e+30 : f32
    %62 = vector.broadcast %cst_21 : f32 to vector<8x8xf32>
    %63 = arith.select %61, %60, %62 : vector<8x8xi1>, vector<8x8xf32>
    %cst_22 = arith.constant dense<0xFF800000> : vector<8xf32>
    %64 = vector.multi_reduction <maximumf>, %63, %cst_22 [1] : vector<8x8xf32> to vector<8xf32>
    %65 = vector.shape_cast %64 : vector<8xf32> to vector<8x1xf32>
    %66 = vector.broadcast %65 : vector<8x1xf32> to vector<8x8xf32>
    %67 = arith.subf %63, %66 : vector<8x8xf32>
    %68 = math.exp %67 : vector<8x8xf32>
    %cst_23 = arith.constant dense<0.000000e+00> : vector<8xf32>
    %69 = vector.multi_reduction <add>, %68, %cst_23 [1] : vector<8x8xf32> to vector<8xf32>
    %70 = vector.shape_cast %69 : vector<8xf32> to vector<8x1xf32>
    %71 = tpu.reciprocal %70 {approx = true} : vector<8x1xf32> -> vector<8x1xf32>
    %72 = vector.broadcast %71 : vector<8x1xf32> to vector<8x8xf32>
    %73 = arith.mulf %68, %72 : vector<8x8xf32>
    %74 = arith.truncf %73 : vector<8x8xf32> to vector<8x8xbf16>
    %cst_24 = arith.constant dense<0.000000e+00> : vector<8x32xf32>
    %75 = tpu.matmul %74, %59, %cst_24 {dimension_numbers = #tpu.dot_dimension_numbers<[1], [0], [0], [1], [0, 0, 1, 1], [], []>} : vector<8x8xbf16>, vector<8x32xbf16>, vector<8x32xf32> -> vector<8x32xf32>
    %76 = arith.truncf %75 : vector<8x32xf32> to vector<8x32xbf16>
    %c0_25 = arith.constant 0 : index
    %c32 = arith.constant 32 : index
    %77 = vector.load %arg11[%c0_25, %c32] : memref<8x128xbf16, #tpu.memory_space<vmem>>, vector<8x32xbf16>
    tpu.vector_store %arg11[%c0_25, %c32], %76 {strides = array<i32>} : memref<8x128xbf16, #tpu.memory_space<vmem>>, vector<8x32xbf16>,
    %78 = vector.extract_strided_slice %24 {offsets = [0, 64], sizes = [8, 32], strides = [1, 1]} : vector<8x128xf32> to vector<8x32xf32>
    %79 = arith.truncf %78 : vector<8x32xf32> to vector<8x32xbf16>
    %80 = vector.extract_strided_slice %26 {offsets = [0, 64], sizes = [8, 32], strides = [1, 1]} : vector<8x128xf32> to vector<8x32xf32>
    %81 = arith.truncf %80 : vector<8x32xf32> to vector<8x32xbf16>
    %82 = vector.extract_strided_slice %27 {offsets = [0, 64], sizes = [8, 32], strides = [1, 1]} : vector<8x128xf32> to vector<8x32xf32>
    %83 = arith.truncf %82 : vector<8x32xf32> to vector<8x32xbf16>
    %cst_26 = arith.constant dense<0.000000e+00> : vector<8x8xf32>
    %84 = tpu.matmul %79, %81, %cst_26 {dimension_numbers = #tpu.dot_dimension_numbers<[1], [1], [0], [0], [0, 0, 1, 0], [], []>} : vector<8x32xbf16>, vector<8x32xbf16>, vector<8x8xf32> -> vector<8x8xf32>
    %85 = arith.cmpi sle, %29, %28 : vector<8x8xi32>
    %cst_27 = arith.constant -1.000000e+30 : f32
    %86 = vector.broadcast %cst_27 : f32 to vector<8x8xf32>
    %87 = arith.select %85, %84, %86 : vector<8x8xi1>, vector<8x8xf32>
    %cst_28 = arith.constant dense<0xFF800000> : vector<8xf32>
    %88 = vector.multi_reduction <maximumf>, %87, %cst_28 [1] : vector<8x8xf32> to vector<8xf32>
    %89 = vector.shape_cast %88 : vector<8xf32> to vector<8x1xf32>
    %90 = vector.broadcast %89 : vector<8x1xf32> to vector<8x8xf32>
    %91 = arith.subf %87, %90 : vector<8x8xf32>
    %92 = math.exp %91 : vector<8x8xf32>
    %cst_29 = arith.constant dense<0.000000e+00> : vector<8xf32>
    %93 = vector.multi_reduction <add>, %92, %cst_29 [1] : vector<8x8xf32> to vector<8xf32>
    %94 = vector.shape_cast %93 : vector<8xf32> to vector<8x1xf32>
    %95 = tpu.reciprocal %94 {approx = true} : vector<8x1xf32> -> vector<8x1xf32>
    %96 = vector.broadcast %95 : vector<8x1xf32> to vector<8x8xf32>
    %97 = arith.mulf %92, %96 : vector<8x8xf32>
    %98 = arith.truncf %97 : vector<8x8xf32> to vector<8x8xbf16>
    %cst_30 = arith.constant dense<0.000000e+00> : vector<8x32xf32>
    %99 = tpu.matmul %98, %83, %cst_30 {dimension_numbers = #tpu.dot_dimension_numbers<[1], [0], [0], [1], [0, 0, 1, 1], [], []>} : vector<8x8xbf16>, vector<8x32xbf16>, vector<8x32xf32> -> vector<8x32xf32>
    %100 = arith.truncf %99 : vector<8x32xf32> to vector<8x32xbf16>
    %c0_31 = arith.constant 0 : index
    %c64 = arith.constant 64 : index
    %101 = vector.load %arg11[%c0_31, %c64] : memref<8x128xbf16, #tpu.memory_space<vmem>>, vector<8x32xbf16>
    tpu.vector_store %arg11[%c0_31, %c64], %100 {strides = array<i32>} : memref<8x128xbf16, #tpu.memory_space<vmem>>, vector<8x32xbf16>,
    %102 = vector.extract_strided_slice %24 {offsets = [0, 96], sizes = [8, 32], strides = [1, 1]} : vector<8x128xf32> to vector<8x32xf32>
    %103 = arith.truncf %102 : vector<8x32xf32> to vector<8x32xbf16>
    %104 = vector.extract_strided_slice %26 {offsets = [0, 96], sizes = [8, 32], strides = [1, 1]} : vector<8x128xf32> to vector<8x32xf32>
    %105 = arith.truncf %104 : vector<8x32xf32> to vector<8x32xbf16>
    %106 = vector.extract_strided_slice %27 {offsets = [0, 96], sizes = [8, 32], strides = [1, 1]} : vector<8x128xf32> to vector<8x32xf32>
    %107 = arith.truncf %106 : vector<8x32xf32> to vector<8x32xbf16>
    %cst_32 = arith.constant dense<0.000000e+00> : vector<8x8xf32>
    %108 = tpu.matmul %103, %105, %cst_32 {dimension_numbers = #tpu.dot_dimension_numbers<[1], [1], [0], [0], [0, 0, 1, 0], [], []>} : vector<8x32xbf16>, vector<8x32xbf16>, vector<8x8xf32> -> vector<8x8xf32>
    %109 = arith.cmpi sle, %29, %28 : vector<8x8xi32>
    %cst_33 = arith.constant -1.000000e+30 : f32
    %110 = vector.broadcast %cst_33 : f32 to vector<8x8xf32>
    %111 = arith.select %109, %108, %110 : vector<8x8xi1>, vector<8x8xf32>
    %cst_34 = arith.constant dense<0xFF800000> : vector<8xf32>
    %112 = vector.multi_reduction <maximumf>, %111, %cst_34 [1] : vector<8x8xf32> to vector<8xf32>
    %113 = vector.shape_cast %112 : vector<8xf32> to vector<8x1xf32>
    %114 = vector.broadcast %113 : vector<8x1xf32> to vector<8x8xf32>
    %115 = arith.subf %111, %114 : vector<8x8xf32>
    %116 = math.exp %115 : vector<8x8xf32>
    %cst_35 = arith.constant dense<0.000000e+00> : vector<8xf32>
    %117 = vector.multi_reduction <add>, %116, %cst_35 [1] : vector<8x8xf32> to vector<8xf32>
    %118 = vector.shape_cast %117 : vector<8xf32> to vector<8x1xf32>
    %119 = tpu.reciprocal %118 {approx = true} : vector<8x1xf32> -> vector<8x1xf32>
    %120 = vector.broadcast %119 : vector<8x1xf32> to vector<8x8xf32>
    %121 = arith.mulf %116, %120 : vector<8x8xf32>
    %122 = arith.truncf %121 : vector<8x8xf32> to vector<8x8xbf16>
    %cst_36 = arith.constant dense<0.000000e+00> : vector<8x32xf32>
    %123 = tpu.matmul %122, %107, %cst_36 {dimension_numbers = #tpu.dot_dimension_numbers<[1], [0], [0], [1], [0, 0, 1, 1], [], []>} : vector<8x8xbf16>, vector<8x32xbf16>, vector<8x32xf32> -> vector<8x32xf32>
    %124 = arith.truncf %123 : vector<8x32xf32> to vector<8x32xbf16>
    %c0_37 = arith.constant 0 : index
    %c96 = arith.constant 96 : index
    %125 = vector.load %arg11[%c0_37, %c96] : memref<8x128xbf16, #tpu.memory_space<vmem>>, vector<8x32xbf16>
    tpu.vector_store %arg11[%c0_37, %c96], %124 {strides = array<i32>} : memref<8x128xbf16, #tpu.memory_space<vmem>>, vector<8x32xbf16>,
    %c0_38 = arith.constant 0 : index
    %c0_39 = arith.constant 0 : index
    %126 = vector.load %arg11[%c0_38, %c0_39] : memref<8x128xbf16, #tpu.memory_space<vmem>>, vector<8x128xbf16>
    %c0_40 = arith.constant 0 : index
    %c0_41 = arith.constant 0 : index
    %c0_42 = arith.constant 0 : index
    %127 = vector.load %arg6[%c0_40, %c0_41, %c0_42] : memref<1x128x128xbf16, #tpu.memory_space<vmem>>, vector<1x128x128xbf16>
    %128 = vector.shape_cast %127 : vector<1x128x128xbf16> to vector<128x128xbf16>
    %cst_43 = arith.constant dense<0.000000e+00> : vector<8x128xf32>
    %129 = tpu.matmul %126, %128, %cst_43 {dimension_numbers = #tpu.dot_dimension_numbers<[1], [0], [0], [1], [0, 0, 1, 1], [], []>} : vector<8x128xbf16>, vector<128x128xbf16>, vector<8x128xf32> -> vector<8x128xf32>
    %130 = arith.addf %3, %129 : vector<8x128xf32>
    %131 = arith.mulf %130, %130 : vector<8x128xf32>
    %cst_44 = arith.constant dense<0.000000e+00> : vector<8xf32>
    %132 = vector.multi_reduction <add>, %131, %cst_44 [1] : vector<8x128xf32> to vector<8xf32>
    %133 = vector.shape_cast %132 : vector<8xf32> to vector<8x1xf32>
    %cst_45 = arith.constant 1.280000e+02 : f32
    %134 = vector.broadcast %cst_45 : f32 to vector<8x1xf32>
    %135 = arith.divf %133, %134 : vector<8x1xf32>
    %cst_46 = arith.constant 9.99999974E-6 : f32
    %136 = vector.broadcast %cst_46 : f32 to vector<8x1xf32>
    %137 = arith.addf %135, %136 : vector<8x1xf32>
    %138 = math.rsqrt %137 : vector<8x1xf32>
    %139 = vector.broadcast %138 : vector<8x1xf32> to vector<8x128xf32>
    %140 = arith.mulf %130, %139 : vector<8x128xf32>
    %c0_47 = arith.constant 0 : index
    %c0_48 = arith.constant 0 : index
    %c0_49 = arith.constant 0 : index
    %141 = vector.load %arg4[%c0_47, %c0_48, %c0_49] : memref<1x1x128xf32, #tpu.memory_space<vmem>>, vector<1x1x128xf32>
    %142 = vector.shape_cast %141 : vector<1x1x128xf32> to vector<1x128xf32>
    %143 = vector.broadcast %142 : vector<1x128xf32> to vector<8x128xf32>
    %144 = arith.mulf %140, %143 : vector<8x128xf32>
    %145 = arith.truncf %144 : vector<8x128xf32> to vector<8x128xbf16>
    %c0_50 = arith.constant 0 : index
    %c0_51 = arith.constant 0 : index
    %c0_52 = arith.constant 0 : index
    %146 = vector.load %arg7[%c0_50, %c0_51, %c0_52] : memref<1x128x768xbf16, #tpu.memory_space<vmem>>, vector<1x128x768xbf16>
    %147 = vector.shape_cast %146 : vector<1x128x768xbf16> to vector<128x768xbf16>
    %cst_53 = arith.constant dense<0.000000e+00> : vector<8x768xf32>
    %148 = tpu.matmul %145, %147, %cst_53 {dimension_numbers = #tpu.dot_dimension_numbers<[1], [0], [0], [1], [0, 0, 1, 1], [], []>} : vector<8x128xbf16>, vector<128x768xbf16>, vector<8x768xf32> -> vector<8x768xf32>
    %149 = vector.extract_strided_slice %148 {offsets = [0, 0], sizes = [8, 384], strides = [1, 1]} : vector<8x768xf32> to vector<8x384xf32>
    %150 = vector.extract_strided_slice %148 {offsets = [0, 384], sizes = [8, 384], strides = [1, 1]} : vector<8x768xf32> to vector<8x384xf32>
    %151 = arith.negf %149 : vector<8x384xf32>
    %152 = math.exp %151 : vector<8x384xf32>
    %cst_54 = arith.constant 1.000000e+00 : f32
    %153 = vector.broadcast %cst_54 : f32 to vector<8x384xf32>
    %154 = arith.addf %153, %152 : vector<8x384xf32>
    %155 = arith.divf %153, %154 : vector<8x384xf32>
    %156 = arith.mulf %149, %155 : vector<8x384xf32>
    %157 = arith.mulf %156, %150 : vector<8x384xf32>
    %158 = arith.truncf %157 : vector<8x384xf32> to vector<8x384xbf16>
    %c0_55 = arith.constant 0 : index
    %c0_56 = arith.constant 0 : index
    %c0_57 = arith.constant 0 : index
    %159 = vector.load %arg8[%c0_55, %c0_56, %c0_57] : memref<1x384x128xbf16, #tpu.memory_space<vmem>>, vector<1x384x128xbf16>
    %160 = vector.shape_cast %159 : vector<1x384x128xbf16> to vector<384x128xbf16>
    %cst_58 = arith.constant dense<0.000000e+00> : vector<8x128xf32>
    %161 = tpu.matmul %158, %160, %cst_58 {dimension_numbers = #tpu.dot_dimension_numbers<[1], [0], [0], [1], [0, 0, 1, 1], [], []>} : vector<8x384xbf16>, vector<384x128xbf16>, vector<8x128xf32> -> vector<8x128xf32>
    %162 = arith.addf %130, %161 : vector<8x128xf32>
    %c0_59 = arith.constant 0 : index
    %c0_60 = arith.constant 0 : index
    %163 = vector.load %arg10[%c0_59, %c0_60] : memref<8x128xf32, #tpu.memory_space<vmem>>, vector<8x128xf32>
    tpu.vector_store %arg10[%c0_59, %c0_60], %162 {strides = array<i32>} : memref<8x128xf32, #tpu.memory_space<vmem>>, vector<8x128xf32>,
    %c3_i32 = arith.constant 3 : i32
    %164 = arith.cmpi eq, %arg0, %c3_i32 : i32
    %165 = arith.extui %164 : i1 to i32
    %c0_i32_61 = arith.constant 0 : i32
    %166 = arith.cmpi ne, %165, %c0_i32_61 : i32
    scf.if %166 {
      %c0_62 = arith.constant 0 : index
      %c0_63 = arith.constant 0 : index
      %167 = vector.load %arg9[%c0_62, %c0_63] : memref<8x128xf32, #tpu.memory_space<vmem>>, vector<8x128xf32>
      tpu.vector_store %arg9[%c0_62, %c0_63], %162 {strides = array<i32>} : memref<8x128xf32, #tpu.memory_space<vmem>>, vector<8x128xf32>,
    } else {
    }
    return
  }
  func.func @transform_0(%arg0: i32) -> (i32, i32) {
    %c0_i32 = arith.constant 0 : i32
    %c0_i32_0 = arith.constant 0 : i32
    %c0_i32_1 = arith.constant 0 : i32
    return %c0_i32, %c0_i32_0 : i32, i32
  }
  func.func @transform_1(%arg0: i32) -> (i32, i32) {
    %c0_i32 = arith.constant 0 : i32
    %c0_i32_0 = arith.constant 0 : i32
    %c0_i32_1 = arith.constant 0 : i32
    return %c0_i32, %c0_i32_0 : i32, i32
  }
  func.func @transform_2(%arg0: i32) -> (i32, i32, i32) {
    %c0_i32 = arith.constant 0 : i32
    %c0_i32_0 = arith.constant 0 : i32
    %c0_i32_1 = arith.constant 0 : i32
    return %arg0, %c0_i32, %c0_i32_0 : i32, i32, i32
  }
  func.func @transform_3(%arg0: i32) -> (i32, i32, i32) {
    %c0_i32 = arith.constant 0 : i32
    %c0_i32_0 = arith.constant 0 : i32
    %c0_i32_1 = arith.constant 0 : i32
    return %arg0, %c0_i32, %c0_i32_0 : i32, i32, i32
  }
  func.func @transform_4(%arg0: i32) -> (i32, i32, i32) {
    %c0_i32 = arith.constant 0 : i32
    %c0_i32_0 = arith.constant 0 : i32
    %c0_i32_1 = arith.constant 0 : i32
    return %arg0, %c0_i32, %c0_i32_0 : i32, i32, i32
  }
  func.func @transform_5(%arg0: i32) -> (i32, i32, i32) {
    %c0_i32 = arith.constant 0 : i32
    %c0_i32_0 = arith.constant 0 : i32
    %c0_i32_1 = arith.constant 0 : i32
    return %arg0, %c0_i32, %c0_i32_0 : i32, i32, i32
  }
  func.func @transform_6(%arg0: i32) -> (i32, i32, i32) {
    %c0_i32 = arith.constant 0 : i32
    %c0_i32_0 = arith.constant 0 : i32
    %c0_i32_1 = arith.constant 0 : i32
    return %arg0, %c0_i32, %c0_i32_0 : i32, i32, i32
  }
  func.func @transform_7(%arg0: i32) -> (i32, i32, i32) {
    %c0_i32 = arith.constant 0 : i32
    %c0_i32_0 = arith.constant 0 : i32
    %c0_i32_1 = arith.constant 0 : i32
    return %arg0, %c0_i32, %c0_i32_0 : i32, i32, i32
  }
  func.func @transform_8(%arg0: i32) -> (i32, i32) {
    %c0_i32 = arith.constant 0 : i32
    %c0_i32_0 = arith.constant 0 : i32
    %c0_i32_1 = arith.constant 0 : i32
    return %c0_i32, %c0_i32_0 : i32, i32
  }
}

</mosaic_0001>

<bundles_post_ra>
// kernel: tpu_custom_call.1
= control target key start
LH: loop header
LB: loop body
LE: loop exit
PB: predicated region body
PF: predicated region fallthrough
CT: control target
= control target key end

     0   :  { %s3685_s0 = inlined_call_operand.hbm [shape: f32[8,128], index: 0, kind: input, shape index: {}]   ;;  %s3686_s1 = inlined_call_operand.hbm [shape: f32[8,128], index: 1, kind: input, shape index: {}]   ;;  %s3687_s2 = inlined_call_operand.vmem [shape: f32[4,1,128], index: 2, kind: input, shape index: {}]   ;;  %s3688_s3 = inlined_call_operand.vmem [shape: f32[4,1,128], index: 3, kind: input, shape index: {}]   ;;  %s3689_s4 = inlined_call_operand.hbm [shape: bf16[4,128,384], index: 4, kind: input, shape index: {}]   ;;  %s3690_s5 = inlined_call_operand.hbm [shape: bf16[4,128,128], index: 5, kind: input, shape index: {}]   ;;  %s3691_s6 = inlined_call_operand.hbm [shape: bf16[4,128,768], index: 6, kind: input, shape index: {}]   ;;  %s3692_s7 = inlined_call_operand.hbm [shape: bf16[4,384,128], index: 7, kind: input, shape index: {}]   ;;  %s3693_s8 = inlined_call_operand.hbm [shape: f32[8,128], index: 8, kind: output, shape index: {}]  }
   0x1   :  { %3707 = sst [smem:[#allocation20_spill]] %s3685_s0 }
   0x2   :  { %3708 = sst [smem:[#allocation21_spill]] %s3689_s4 }
   0x3   :  { %3709 = sst [smem:[#allocation22_spill]] %s3690_s5 }
   0x4   :  { %13 = vsyncpa [#allocation5], 0 }
   0x5   :  { %14 = vsyncpa [#allocation8], 0 }
   0x6   :  { %15 = vsyncpa [#allocation6], 0  ;;  %s3120_s27 = smov 0   ;;  %s3122_s28 = smov 0  }
   0x7   :  { %s3124_s29 = smov 0   ;;  %s3126_s30 = smov 0  }
   0x8 LB: > { %3710 = sst [smem:[#allocation18_spill]] %s3050_s29  ;;  %s3139_s9 = sadd.s32 4294967295, %s3054_s30   ;;  %s3054_s30 = sphi %s3126_s30, %s3740_s30   ;;  %s3050_s29 = sphi %s3124_s29, %s3737_s29   ;;  %s3046_s28 = sphi %s3122_s28, %s3739_s28   ;;  %s3042_s27 = sphi %s3120_s27, %s3738_s27  }
   0x9   : > { %s3142_s10 = sadd.s32 1, %s3054_s30   ;;  %s122_s12 = sadd.s32 1, %s3050_s29 }
   0xa   : > { %s119_s11 = ssub.s32 %s3054_s30, %s3142_s10  ;;  %p129_p1 = scmp.ne.s32.totalorder %s3050_s29, %s3046_s28 }
   0xb   : > { %p120_p0 = scmp.eq.s32.totalorder %s119_s11, 0  ;;  %p130_p2 = scmp.eq.s32.totalorder %s3054_s30, 0 }
   0xc   : > { %p135_p3 = scmp.ne.s32.totalorder %s3046_s28, %s3042_s27  ;;  %p3694_p5 = scmp.eq.s32.totalorder %s3139_s9, 0 }
   0xd   : > { %s3152_s13 = scalar_select %p120_p0, %s3050_s29, %s122_s12  }
   0xe   : > { %p3154_p4 = por %p130_p2, %p129_p1  ;;  %p2219_p6 = scmp.ge.s32.totalorder %s3054_s30, 1 }
   0xf   : > { %3711 = sst [smem:[#allocation19_spill]] %s3152_s13  ;;  %p245_p7 = scmp.lt.s32.totalorder %s3054_s30, 5 }
  0x10   : > { %p3163_p8 = por %p3694_p5, %p135_p3  ;;  %s3056_s17 = smov [#allocation4]  }
  0x11   : > { %p3168_p10 = pnand %p2219_p6, %p245_p7  ;;  %s258_s18 = sshll.u32 %s3056_s17, 4  ;;  %s259_s18 = int_to_ptr.vmem [resolvable:$true] %s258_s18 }
  0x12   : > { %s3713_s15 = scalar_select %p3163_p8, 1, 0 }
  0x13   : > { %s3714_s16 = scalar_select %p3168_p10, 1, 0 }
  0x14   : > { %p2564_p11 = pneg %p3168_p10  ;;  %p2586_p12 = scmp.lt.s32.totalorder %s3054_s30, 4 }
  0x15   : > { %s292_s19 = sand.u32 1, %s3054_s30   ;;  %s3189_s22 = sand.u32 1, %s3050_s29  }
  0x16   : > { %p3178_p13 = pnand %p2564_p11, %p3694_p5  ;;  %p3184_p0 = pnand %p2586_p12, %p3154_p4 }
  0x17   : > { %s3698_s23 = smul.u32 192, %s3189_s22  ;;  %s3717_s0 = sld [smem:[#allocation20_spill]] }
  0x18   : > { %s3715_s20 = scalar_select %p3178_p13, 1, 0 }
  0x19   : > { %s3716_s21 = scalar_select %p3184_p0, 1, 0 }
  0x1a   : > { %p3700_p2 = pneg %p3178_p13 }
  0x1d   : > { %s2806_s26 = scalar_lea.hbm %s3717_s0, 128 }
  0x1e   : > { %p2807_p1 = scmp.ne.s32.totalorder %s3717_s0, %s2806_s26  ;;  %p2813_p6 = scmp.lt.u32.totalorder %s2806_s26, %s3717_s0 }
  0x20   : > { %p2809_p3 = pnand %p3700_p2, %p2807_p1 }
  0x22   : > { %p2810_p4 = pneg %p2809_p3 }
  0x24   : > { %p2815_p7 = pnand %p2813_p6, %p2810_p4 }
  0x26   : > { %2818 = shalt.err (!%p2815_p7)
}
  0x27   : > { %s2819_s17 = scalar_lea.vmem %s259_s18, 128  ;;  %p2827_p5 = scmp.lt.s32.totalorder %s259_s18, %s259_s18 }
  0x28   : > { %p2820_p11 = scmp.ne.s32.totalorder %s259_s18, %s2819_s17  ;;  %p2828_p8 = scmp.lt.s32.totalorder %s2819_s17, %s2819_s17 }
  0x2a   : > { %p2822_p12 = pnand %p2820_p11, %p3700_p2  ;;  %p2829_p10 = por %p2828_p8, %p2827_p5 }
  0x2c   : > { %p2823_p9 = pneg %p2822_p12 }
  0x2e   : > { %p2830_p0 = pnand %p2829_p10, %p2823_p9 }
  0x30   : > { %2833 = shalt.err (!%p2830_p0)
}
  0x31   : > { %2567 = dma.hbm_to_vmem [thread:$0]  (!%p3178_p13), %s3717_s0, 128, %s259_s18, [#allocation5]  }
  0x32   : > { %s3699_s26 = smul.u32 3072, %s3054_s30  ;;  %s296_s27 = scalar_lea.vmem [#allocation9], %s3698_s23 }
  0x33   : > { %s303_s11 = sshll.u32 %s296_s27, 4  ;;  %s3718_s4 = sld [smem:[#allocation21_spill]]  ;;  %s3217_s11 = int_to_ptr.vmem [resolvable:$true] %s303_s11 }
  0x34   : > { %s3226_s24 = scalar_lea.sflag [#allocation5], %s292_s19  ;;  %p3719_p8 = scmp.ne.s32.totalorder %s3716_s21, 0 }
  0x36   : > { %p3232_p9 = pneg %p3719_p8 }
  0x38   : > { %s3720_s18 = scalar_select %p3232_p9, 1, 0 }
  0x39   : > { %s3224_s17 = scalar_lea.hbm %s3718_s4, %s3699_s26  ;;  %s2839_s14 = scalar_lea.hbm %s3718_s4, 12288 }
  0x3a   : > { %s2834_s25 = scalar_lea.hbm %s3224_s17, 3072  ;;  %p2840_p1 = scmp.lt.u32.totalorder %s3224_s17, %s3718_s4 }
  0x3b   : > { %p2835_p5 = scmp.ne.s32.totalorder %s3224_s17, %s2834_s25  ;;  %p2841_p3 = scmp.lt.u32.totalorder %s2839_s14, %s2834_s25 }
  0x3c   : > { %p2843_p6 = scmp.lt.u32.totalorder %s2834_s25, %s3224_s17 }
  0x3d   : > { %p2837_p10 = pnand %p3232_p9, %p2835_p5  ;;  %p2842_p4 = por %p2841_p3, %p2840_p1 }
  0x3f   : > { %p2838_p0 = pneg %p2837_p10  ;;  %p2844_p7 = por %p2843_p6, %p2842_p4 }
  0x41   : > { %p2845_p11 = pnand %p2844_p7, %p2838_p0 }
  0x43   : > { %2848 = shalt.err (!%p2845_p11)
}
  0x44   : > { %s2849_s19 = scalar_lea.vmem %s3217_s11, 3072  ;;  %s3057_s27 = smov [#allocation9]  }
  0x45   : > { %p2850_p12 = scmp.ne.s32.totalorder %s3217_s11, %s2849_s19  ;;  %s2854_s12 = sshll.u32 %s3057_s27, 4  ;;  %s2855_s12 = int_to_ptr.vmem [resolvable:$false] %s2854_s12 }
  0x46   : > { %s2856_s23 = scalar_lea.vmem %s2855_s12, 6144  ;;  %p2857_p2 = scmp.lt.s32.totalorder %s3217_s11, %s2855_s12 }
  0x47   : > { %p2852_p5 = pnand %p2850_p12, %p3232_p9  ;;  %p2858_p13 = scmp.lt.s32.totalorder %s2856_s23, %s2849_s19 }
  0x49   : > { %p2853_p10 = pneg %p2852_p5  ;;  %p2859_p1 = por %p2858_p13, %p2857_p2 }
  0x4b   : > { %p2860_p3 = pnand %p2859_p1, %p2853_p10 }
  0x4d   : > { %2863 = shalt.err (!%p2860_p3)
}
  0x4e   : > { %s3058_s26 = smov 192   ;;  %s3059_s25 = smov 12  }
  0x4f   : > { %2574 = dma.hbm_to_vmem [thread:$0]  (!%p3719_p8), %s3224_s17, 3072, %s3217_s11, %s3226_s24, %s3058_s26, %s3058_s26, %s3059_s25  }
  0x50   : > { %s2224_s14 = sshll.u32 %s3189_s22, 6  ;;  %s2359_s27 = sshll.u32 %s3054_s30, 10 }
  0x51   : > { %s3721_s5 = sld [smem:[#allocation22_spill]]  ;;  %s317_s12 = scalar_lea.vmem [#allocation10], %s2224_s14 }
  0x52   : > { %s324_s23 = sshll.u32 %s317_s12, 4  ;;  %s3263_s23 = int_to_ptr.vmem [resolvable:$true] %s324_s23 }
  0x57   : > { %s3261_s19 = scalar_lea.hbm %s3721_s5, %s2359_s27  ;;  %s2869_s26 = scalar_lea.hbm %s3721_s5, 4096 }
  0x58   : > { %s2864_s13 = scalar_lea.hbm %s3261_s19, 1024  ;;  %p2870_p4 = scmp.lt.u32.totalorder %s3261_s19, %s3721_s5 }
  0x59   : > { %p2865_p13 = scmp.ne.s32.totalorder %s3261_s19, %s2864_s13  ;;  %p2871_p6 = scmp.lt.u32.totalorder %s2869_s26, %s2864_s13 }
  0x5a   : > { %p2873_p11 = scmp.lt.u32.totalorder %s2864_s13, %s3261_s19 }
  0x5b   : > { %p2867_p2 = pnand %p2865_p13, %p3232_p9  ;;  %p2872_p7 = por %p2871_p6, %p2870_p4 }
  0x5d   : > { %p2868_p0 = pneg %p2867_p2  ;;  %p2874_p12 = por %p2873_p11, %p2872_p7 }
  0x5f   : > { %p2875_p5 = pnand %p2874_p12, %p2868_p0 }
  0x61   : > { %2878 = shalt.err (!%p2875_p5)
}
  0x62   : > { %s2879_s25 = scalar_lea.vmem %s3263_s23, 1024  ;;  %s3060_s14 = smov [#allocation10]  }
  0x63   : > { %p2880_p10 = scmp.ne.s32.totalorder %s3263_s23, %s2879_s25  ;;  %s2884_s27 = sshll.u32 %s3060_s14, 4  ;;  %s2885_s27 = int_to_ptr.vmem [resolvable:$false] %s2884_s27 }
  0x64   : > { %s2886_s12 = scalar_lea.vmem %s2885_s27, 2048  ;;  %p2887_p13 = scmp.lt.s32.totalorder %s3263_s23, %s2885_s27 }
  0x65   : > { %p2882_p1 = pnand %p2880_p10, %p3232_p9  ;;  %p2888_p2 = scmp.lt.s32.totalorder %s2886_s12, %s2879_s25 }
  0x67   : > { %p2883_p3 = pneg %p2882_p1  ;;  %p2889_p4 = por %p2888_p2, %p2887_p13 }
  0x69   : > { %p2890_p6 = pnand %p2889_p4, %p2883_p3 }
  0x6b   : > { %2893 = shalt.err (!%p2890_p6)
}
  0x6c   : > { %s3061_s13 = smov 64   ;;  %s3062_s11 = smov 4  }
  0x6d   : > { %2577 = dma.hbm_to_vmem [thread:$0]  (!%p3719_p8), %s3261_s19, 1024, %s3263_s23, %s3226_s24, %s3061_s13, %s3061_s13, %s3062_s11  }
  0x6e   : > { %s2538_s17 = smul.u32 384, %s3189_s22  ;;  %s3063_s12 = smov [#allocation7]  }
  0x6f   : > { %s2539_s26 = smul.u32 6144, %s3054_s30  ;;  %s3299_s5 = sshll.u32 %s3063_s12, 4  ;;  %s270_s5 = int_to_ptr.vmem [resolvable:$true] %s3299_s5 }
  0x70   : > { %s338_s14 = scalar_lea.vmem [#allocation11], %s2538_s17 }
  0x71   : > { %s3295_s25 = scalar_lea.hbm %s3691_s6, %s2539_s26  ;;  %s345_s27 = sshll.u32 %s338_s14, 4  ;;  %s3297_s27 = int_to_ptr.vmem [resolvable:$true] %s345_s27 }
  0x72   : > { %s2894_s29 = scalar_lea.hbm %s3295_s25, 6144  ;;  %s2899_s26 = scalar_lea.hbm %s3691_s6, 24576 }
  0x73   : > { %p2895_p0 = scmp.ne.s32.totalorder %s3295_s25, %s2894_s29  ;;  %p2900_p12 = scmp.lt.u32.totalorder %s3295_s25, %s3691_s6 }
  0x74   : > { %p2901_p5 = scmp.lt.u32.totalorder %s2899_s26, %s2894_s29  ;;  %p2903_p1 = scmp.lt.u32.totalorder %s2894_s29, %s3295_s25 }
  0x75   : > { %p2897_p7 = pnand %p2895_p0, %p3232_p9 }
  0x76   : > { %p2902_p10 = por %p2901_p5, %p2900_p12 }
  0x77   : > { %p2898_p11 = pneg %p2897_p7 }
  0x78   : > { %p2904_p3 = por %p2903_p1, %p2902_p10 }
  0x7a   : > { %p2905_p13 = pnand %p2904_p3, %p2898_p11 }
  0x7c   : > { %2908 = shalt.err (!%p2905_p13)
}
  0x7d   : > { %s2909_s17 = scalar_lea.vmem %s3297_s27, 6144  ;;  %s3064_s14 = smov [#allocation11]  }
  0x7e   : > { %p2910_p2 = scmp.ne.s32.totalorder %s3297_s27, %s2909_s17  ;;  %s2914_s12 = sshll.u32 %s3064_s14, 4  ;;  %s2915_s12 = int_to_ptr.vmem [resolvable:$false] %s2914_s12 }
  0x7f   : > { %s2916_s19 = scalar_lea.vmem %s2915_s12, 12288  ;;  %p2917_p0 = scmp.lt.s32.totalorder %s3297_s27, %s2915_s12 }
  0x80   : > { %p2912_p4 = pnand %p2910_p2, %p3232_p9  ;;  %p2918_p7 = scmp.lt.s32.totalorder %s2916_s19, %s2909_s17 }
  0x82   : > { %p2913_p6 = pneg %p2912_p4  ;;  %p2919_p12 = por %p2918_p7, %p2917_p0 }
  0x84   : > { %p2920_p5 = pnand %p2919_p12, %p2913_p6 }
  0x86   : > { %2923 = shalt.err (!%p2920_p5)
}
  0x87   : > { %s3065_s29 = smov 384   ;;  %s3066_s23 = smov 24  }
  0x88   : > { %2580 = dma.hbm_to_vmem [thread:$0]  (!%p3719_p8), %s3295_s25, 6144, %s3297_s27, %s3226_s24, %s3065_s29, %s3065_s29, %s3066_s23  }
  0x89   : > { %s2924_s4 = scalar_lea.hbm %s3686_s1, 128  ;;  %p3722_p10 = scmp.ne.s32.totalorder %s3715_s20, 0 }
  0x8a   : > { %p2925_p11 = scmp.ne.s32.totalorder %s3686_s1, %s2924_s4  ;;  %p2931_p2 = scmp.lt.u32.totalorder %s2924_s4, %s3686_s1 }
  0x8b   : > { %p3723_p1 = pneg %p3722_p10 }
  0x8d   : > { %p2927_p3 = pnand %p2925_p11, %p3723_p1 }
  0x8f   : > { %p2928_p13 = pneg %p2927_p3 }
  0x91   : > { %p2933_p4 = pnand %p2931_p2, %p2928_p13 }
  0x93   : > { %2936 = shalt.err (!%p2933_p4)
}
  0x94   : > { %s2937_s25 = scalar_lea.vmem %s270_s5, 128  ;;  %p3724_p0 = pmov %p3723_p1 }
  0x95   : > { %p2938_p6 = scmp.ne.s32.totalorder %s270_s5, %s2937_s25  ;;  %p2945_p5 = scmp.lt.s32.totalorder %s270_s5, %s270_s5 }
  0x96   : > { %p2946_p8 = scmp.lt.s32.totalorder %s2937_s25, %s2937_s25 }
  0x97   : > { %p2940_p7 = pnand %p2938_p6, %p3724_p0 }
  0x98   : > { %p2947_p9 = por %p2946_p8, %p2945_p5 }
  0x99   : > { %p2941_p12 = pneg %p2940_p7 }
  0x9b   : > { %p2948_p1 = pnand %p2947_p9, %p2941_p12 }
  0x9d   : > { %2951 = shalt.err (!%p2948_p1)
}
  0x9e   : > { %2570 = dma.hbm_to_vmem [thread:$0]  (!%p3722_p10), %s3686_s1, 128, %s270_s5, [#allocation8]  }
  0x9f   : > { %s3725_s23 = smul.u32 3072, %s3054_s30  ;;  %p3727_p9 = scmp.ne.s32.totalorder %s3720_s18, 0 }
  0xa0   : > { %s3726_s14 = smul.u32 192, %s3189_s22  ;;  %s2957_s19 = scalar_lea.hbm %s3692_s7, 12288 }
  0xa1   : > { %s3349_s4 = scalar_lea.hbm %s3692_s7, %s3725_s23 }
  0xa2   : > { %s359_s17 = scalar_lea.vmem [#allocation12], %s3726_s14  ;;  %s2952_s12 = scalar_lea.hbm %s3349_s4, 3072 }
  0xa3   : > { %s366_s20 = sshll.u32 %s359_s17, 4  ;;  %p2953_p8 = scmp.ne.s32.totalorder %s3349_s4, %s2952_s12  ;;  %s3353_s20 = int_to_ptr.vmem [resolvable:$true] %s366_s20 }
  0xa4   : > { %p2958_p3 = scmp.lt.u32.totalorder %s3349_s4, %s3692_s7  ;;  %p2959_p13 = scmp.lt.u32.totalorder %s2957_s19, %s2952_s12 }
  0xa5   : > { %p2955_p11 = pnand %p2953_p8, %p3727_p9  ;;  %p2961_p4 = scmp.lt.u32.totalorder %s2952_s12, %s3349_s4 }
  0xa6   : > { %p2960_p2 = por %p2959_p13, %p2958_p3 }
  0xa7   : > { %p2956_p10 = pneg %p2955_p11 }
  0xa8   : > { %p2962_p6 = por %p2961_p4, %p2960_p2 }
  0xaa   : > { %p2963_p0 = pnand %p2962_p6, %p2956_p10 }
  0xac   : > { %2966 = shalt.err (!%p2963_p0)
}
  0xad   : > { %s2967_s22 = scalar_lea.vmem %s3353_s20, 3072  ;;  %s3067_s29 = smov [#allocation12]  }
  0xae   : > { %p2968_p7 = scmp.ne.s32.totalorder %s3353_s20, %s2967_s22  ;;  %s2972_s23 = sshll.u32 %s3067_s29, 4  ;;  %s2973_s23 = int_to_ptr.vmem [resolvable:$false] %s2972_s23 }
  0xaf   : > { %s2974_s26 = scalar_lea.vmem %s2973_s23, 6144  ;;  %p2975_p1 = scmp.lt.s32.totalorder %s3353_s20, %s2973_s23 }
  0xb0   : > { %p2970_p12 = pnand %p2968_p7, %p3727_p9  ;;  %p2976_p8 = scmp.lt.s32.totalorder %s2974_s26, %s2967_s22 }
  0xb2   : > { %p2971_p5 = pneg %p2970_p12  ;;  %p2977_p11 = por %p2976_p8, %p2975_p1 }
  0xb4   : > { %p2978_p3 = pnand %p2977_p11, %p2971_p5 }
  0xb6   : > { %2981 = shalt.err (!%p2978_p3)
}
  0xb7   : > { %p3728_p10 = scmp.ne.s32.totalorder %s3716_s21, 0  ;;  %p3729_p9 = scmp.ne.s32.totalorder %s3714_s16, 0 }
  0xb8   : > { %p3730_p13 = scmp.eq.s32.totalorder (!%p3729_p9), %s3139_s9, 0 }
  0xb9   : > { %2583 = dma.hbm_to_vmem [thread:$0]  (!%p3728_p10), %s3349_s4, 3072, %s3353_s20, %s3226_s24, %s3061_s13, %s3061_s13, %s3062_s11  }
  0xba   : > { %378 = sbr.rel (%p3729_p9) target bundleno = 2478 (0x9ae), region = 52 }
  0xc1   : > { %3025 = dma.done.wait (%p3730_p13), [#allocation5], 128   ;;  %p3731_p2 = pmov %p3730_p13 }
  0xc3   : > { %3027 = vsyncadd (%p3731_p2), [#allocation5], 4294967168  ;;  %p3732_p4 = pmov %p3731_p2 }
  0xc4   : > { %p3733_p6 = pmov %p3731_p2 }
  0xc5   : > { %3029 = dma.done.wait (%p3732_p4), [#allocation8], 128  }
  0xc6   : > { %3031 = vsyncadd (%p3733_p6), [#allocation8], 4294967168  ;;  %s388_s21 = sand.u32 1, %s3139_s9   ;;  %s390_s24 = sand.u32 1, %s3046_s28  }
  0xc7   : > { %s2542_s18 = smul.u32 192, %s390_s24  ;;  %s389_s16 = scalar_lea.sflag [#allocation5], %s388_s21 }
  0xc8   : > { %p3734_p0 = scmp.ne.s32.totalorder %s3713_s15, 0 }
  0xc9   : > { %s3392_s13 = scalar_lea.vmem [#allocation9], %s2542_s18 }
  0xca   : > { %3033 = dma.done.wait (%p3734_p0), %s389_s16, 13312  }
  0xcb   : > { %3035 = vsyncadd (%p3734_p0), %s389_s16, 4294953984  ;;  %s2232_s11 = sshll.u32 %s390_s24, 6  ;;  %s2543_s0 = smul.u32 384, %s390_s24 }
  0xcc   : > { %p468_p7 = scmp.lt.s32.totalorder %s3139_s9, 3  ;;  %s3410_s19 = scalar_lea.vmem [#allocation10], %s2232_s11 }
  0xcd   : > { %s3412_s15 = scalar_lea.vmem [#allocation11], %s2543_s0  ;;  %s3414_s25 = scalar_lea.vmem [#allocation12], %s2542_s18 }
  0xce   : > { %s3400_s4 = scalar_select %p468_p7, %s3139_s9, 3 }
  0xcf   : > { %p3735_p12 = scmp.ne.s32.totalorder %s3139_s9, 0 }
  0xd0   : > { %s470_s20 = scalar_lea.vmem %s3687_s2, %s3400_s4  ;;  %s473_s30 = scalar_lea.vmem %s3688_s3, %s3400_s4  ;;  %v479_v0 = vld [vmem:[#allocation4] sm:$0xff] (!%p3735_p12) }
  0xd1   : > { %478 = sbr.rel (%p3735_p12) target bundleno = 216 (0xd8), region = 80  ;;  %480 = vst [vmem:[#allocation2] sm:$0xff] (!%p3735_p12), %v479_v0 }
  0xd8 PF: > { %v3418_v1 = vld [vmem:[#allocation2] sm:$0xff]  ;;  %v3068_v4 = vmov 0.0   ;;  %v2640_v5 = vld [vmem:[%s3392_s13] ss:$12 sps:$4 sm:$0xff]   ;;  %v2648_v11 = vld [vmem:[%s3392_s13 + $0x30] ss:$12 sps:$4 sm:$0xff]   ;;  %v743_v62 = vlaneseq }
  0xd9   : > { %v482_v2 = vmul.f32 %v3418_v1, %v3418_v1  ;;  %v2638_v3 = vld [vmem:[%s3392_s13 + $0x4] ss:$12 sps:$4 sm:$0xff]   ;;  %2428 = vmatprep.subr.bf16.mxu1 %v3068_v4  ;;  %v2641_v6 = vld [vmem:[%s3392_s13 + $0x8] ss:$12 sps:$4 sm:$0xff]   ;;  %v2645_v9 = vld [vmem:[%s3392_s13 + $0x20] ss:$12 sps:$4 sm:$0xff]  }
  0xda   : > { %659 = vmatprep.subr.bf16.mxu0 %v2638_v3  ;;  %v2642_v7 = vld [vmem:[%s3392_s13 + $0x1c] ss:$12 sps:$4 sm:$0xff]   ;;  %v2644_v8 = vld [vmem:[%s3392_s13 + $0x18] ss:$12 sps:$4 sm:$0xff]   ;;  %2429 = vmatpush3.bf16.msra.mxu1 %v2641_v6  ;;  %v2646_v10 = vld [vmem:[%s3392_s13 + $0x34] ss:$12 sps:$4 sm:$0xff]  }
  0xdb   : > { %483 = vadd.xlane.f32.xlu0 %v482_v2  ;;  %660 = vmatpush1.bf16.msra.mxu0 %v2640_v5  ;;  %v2649_v12 = vld [vmem:[%s3392_s13 + $0x38] ss:$12 sps:$4 sm:$0xff]   ;;  %v2652_v14 = vld [vmem:[%s3392_s13 + $0x48] ss:$12 sps:$4 sm:$0xff]   ;;  %v2653_v15 = vld [vmem:[%s3392_s13 + $0x50] ss:$12 sps:$4 sm:$0xff]  }
  0xdc   : > { %661 = vmatprep.subr.bf16.mxu0 %v2642_v7  ;;  %2430 = vmatprep.subr.bf16.mxu1 %v3068_v4  ;;  %v2650_v13 = vld [vmem:[%s3392_s13 + $0x4c] ss:$12 sps:$4 sm:$0xff]   ;;  %v2654_v16 = vld [vmem:[%s3392_s13 + $0x64] ss:$12 sps:$4 sm:$0xff]   ;;  %v2657_v18 = vld [vmem:[%s3392_s13 + $0x68] ss:$12 sps:$4 sm:$0xff]  }
  0xdd   : > { %v2656_v17 = vld [vmem:[%s3392_s13 + $0x60] ss:$12 sps:$4 sm:$0xff]   ;;  %v2658_v19 = vld [vmem:[%s3392_s13 + $0x7c] ss:$12 sps:$4 sm:$0xff]   ;;  %v2660_v20 = vld [vmem:[%s3392_s13 + $0x78] ss:$12 sps:$4 sm:$0xff]  }
  0xde   : > { %2431 = vmatpush3.bf16.msra.mxu1 %v2645_v9  ;;  %v2661_v21 = vld [vmem:[%s3392_s13 + $0x80] ss:$12 sps:$4 sm:$0xff]   ;;  %v2664_v23 = vld [vmem:[%s3392_s13 + $0x90] ss:$12 sps:$4 sm:$0xff]   ;;  %v2665_v24 = vld [vmem:[%s3392_s13 + $0x98] ss:$12 sps:$4 sm:$0xff]  }
  0xdf   : > { %662 = vmatpush1.bf16.msra.mxu0 %v2644_v8  ;;  %2432 = vmatprep.subr.bf16.mxu1 %v3068_v4  ;;  %v2662_v22 = vld [vmem:[%s3392_s13 + $0x94] ss:$12 sps:$4 sm:$0xff]   ;;  %v3069_v25 = vmov 0   ;;  %vm3070_vm0 = vmmov 0   ;;  %v2666_v26 = vld [vmem:[%s3392_s13 + $0xac] ss:$12 sps:$4 sm:$0xff]  }
  0xe0   : > { %663 = vmatprep.subr.bf16.mxu0 %v2646_v10  ;;  %691 = vmatprep.mubr.bf16.mxu0 %v3069_v25  ;;  %v2668_v27 = vld [vmem:[%s3392_s13 + $0xa8] ss:$12 sps:$4 sm:$0xff]   ;;  %v2669_v28 = vld [vmem:[%s3392_s13 + $0xb0] ss:$12 sps:$4 sm:$0xff]   ;;  %v2234_v33 = vld [vmem:[%s470_s20] ss:$0 sm:$0xff] }
  0xe1   : > { %2444 = vmatprep.mubr.msk.bf16.mxu1 %vm3070_vm0, %v3068_v4  ;;  %v740_v37 = vld [vmem:[#allocation7] sm:$0xff]  ;;  %vm815_vm1 = vcmask 1043456   ;;  %vm750_vm2 = vcmask 261120   ;;  %s3071_s29 = smov 96   ;;  %s3072_s23 = smov 64   ;;  %v744_v63 = vshrl.u32 %v743_v62, 7 }
  0xe2   : > { %2433 = vmatpush3.bf16.msra.mxu1 %v2649_v12  ;;  %s3073_s26 = smov 32   ;;  %v746_v0 = vand.u32 127, %v743_v62  ;;  %vm799_vm4 = vcmask 64512   ;;  %vm860_vm5 = vcmask 257024   ;;  %vm983_vm6 = vcmask 519424   ;;  %p2354_p5 = scmp.ne.s32.totalorder %s3139_s9, 3 }
  0xe3   : > { %664 = vmatpush1.bf16.msra.mxu0 %v2648_v11  ;;  %2434 = vmatprep.subr.bf16.mxu1 %v3068_v4  ;;  %vm1103_vm7 = vcmask 781824   ;;  %vm1223_vm8 = vcmask 1044224  }
  0xe4   : > { %665 = vmatprep.subr.bf16.mxu0 %v2650_v13  ;;  %vm797_vm3 = vcmp.le.s32.totalorder %v746_v0, %v744_v63 }
  0xe6   : > { %2435 = vmatpush3.bf16.msra.mxu1 %v2653_v15 }
  0xe7   : > { %666 = vmatpush1.bf16.msra.mxu0 %v2652_v14  ;;  %2436 = vmatprep.subr.bf16.mxu1 %v3068_v4 }
  0xe8   : > { %667 = vmatprep.subr.bf16.mxu0 %v2654_v16 }
  0xea   : > { %2437 = vmatpush3.bf16.msra.mxu1 %v2657_v18 }
  0xeb   : > { %668 = vmatpush1.bf16.msra.mxu0 %v2656_v17  ;;  %2438 = vmatprep.subr.bf16.mxu1 %v3068_v4 }
  0xec   : > { %669 = vmatprep.subr.bf16.mxu0 %v2658_v19 }
  0xee   : > { %2439 = vmatpush3.bf16.msra.mxu1 %v2661_v21 }
  0xef   : > { %670 = vmatpush1.bf16.msra.mxu0 %v2660_v20  ;;  %2440 = vmatprep.subr.bf16.mxu1 %v3068_v4 }
  0xf0   : > { %671 = vmatprep.subr.bf16.mxu0 %v2662_v22 }
  0xf2   : > { %2441 = vmatpush3.bf16.msra.mxu1 %v2665_v24 }
  0xf3   : > { %672 = vmatpush1.bf16.msra.mxu0 %v2664_v23  ;;  %2442 = vmatprep.subr.bf16.mxu1 %v3068_v4 }
  0xf4   : > { %673 = vmatprep.subr.bf16.mxu0 %v2666_v26 }
  0xf6   : > { %2443 = vmatpush3.bf16.msra.mxu1 %v2669_v28 }
  0xf7   : > { %674 = vmatpush1.bf16.msra.mxu0 %v2668_v27  ;;  %2454 = vmatprep.subr.bf16.mxu1 %v3068_v4 }
  0xf8   : > { %2448 = vmatprep.subr.bf16.mxu0 %v3068_v4 }
 0x168   : > { %v484_v29 = vpop.xlane.xlu0 %483 }
 0x169   : > { %v486_v30 = vmul.f32 0.0078125, %v484_v29 }
 0x16b   : > { %v487_v31 = vadd.f32 1e-05, %v486_v30 }
 0x16d   : > { %2774 = vrsqrt.f32 %v487_v31 }
 0x177   : > { %v2775_v32 = vpop.eup %2774 }
 0x178   : > { %v489_v34 = vmul.f32 %v2775_v32, %v3418_v1 }
 0x17a   : > { %v497_v35 = vmul.f32 %v2234_v33, %v489_v34 }
 0x17c   : > { %v498_v36 = vpack.c.bf16 %v497_v35, %v497_v35 }
 0x17e   : > { %692 = vmatmul.mubr.bf16.vlgmr.msra.gmra.mrb[0].mxu0 %v498_v36  ;;  %2445 = vmatmul.mubr.bf16.vlgmr.msra.gmra.mrb[0].mxu1 %v498_v36 }
 0x17f   : > { %2450 = vmatprep.mubr.msk.bf16.mxu0 %vm3070_vm0, %v3068_v4  ;;  %2456 = vmatprep.mubr.msk.bf16.mxu1 %vm3070_vm0, %v3068_v4 }
 0x251   : > { %v693_v38 = vpop.f32.mrb[0].mxu0  ;;  %v734_v39 = vpop.f32.mrb[0].mxu1 }
 0x252   : > { %v741_v40 = vmul.f32 %v740_v37, %v693_v38  ;;  %v3469_v41 = vpack.c.bf16 %v734_v39, %v734_v39  ;;  %v695_v42 = vpop.f32.mrb[1].mxu0  ;;  %v2446_v43 = vpop.f32.mrb[1].mxu1 }
 0x253   : > { %v742_v44 = vmul.f32 %v740_v37, %v695_v42  ;;  %v697_v45 = vpop.f32.mrb[2].mxu0  ;;  %v737_v46 = vpop.f32.mrb[2].mxu1 }
 0x254   : > { %v747_v47 = vpack.c.bf16 %v741_v40, %v741_v40  ;;  %v698_v48 = vpop.f32.mrb[3].mxu0  ;;  %v2447_v49 = vpop.f32.mrb[3].mxu1  ;;  %v817_v50 = vsel %vm815_vm1, %v3469_v41, 0 }
 0x255   : > { %v748_v51 = vpack.c.bf16 %v742_v44, %v742_v44  ;;  %2455 = vmatpush3.bf16.msra.mxu1 %v817_v50 }
 0x256   : > { %863 = vrot.lane.b32.xlu1 %v747_v47, %s3071_s29  ;;  %2466 = vmatprep.subr.bf16.mxu1 %v3068_v4 }
 0x257   : > { %866 = vrot.lane.b32.xlu0 %v748_v51, %s3071_s29  ;;  %v755_v52 = vsel %vm750_vm2, %v748_v51, 0 }
 0x258   : > { %2449 = vmatpush3.bf16.xpose.msra.mxu0 %v755_v52 }
 0x259   : > { %2460 = vmatprep.subr.bf16.mxu0 %v3068_v4 }
 0x25a   : > { %987 = vrot.lane.b32.xlu1 %v748_v51, %s3072_s23 }
 0x25e   : > { %985 = vrot.lane.b32.xlu1 %v747_v47, %s3072_s23 }
 0x25f   : > { %2451 = vmatmul.mubr.msk.bf16.vlgmr.msra.gmra.mrb[4].mxu0 %vm750_vm2, %v747_v47 }
 0x260   : > { %2462 = vmatprep.mubr.msk.bf16.mxu0 %vm3070_vm0, %v3068_v4 }
 0x262   : > { %1107 = vrot.lane.b32.xlu1 %v748_v51, %s3073_s26 }
 0x266   : > { %1105 = vrot.lane.b32.xlu1 %v747_v47, %s3073_s26 }
 0x2c8   : > { %v864_v53 = vpop.permute.xlu1 %863 }
 0x2c9   : > { %v867_v54 = vpop.permute.xlu0 %866 }
 0x2ca   : > { %v872_v55 = vsel %vm750_vm2, %v867_v54, 0 }
 0x2cb   : > { %2461 = vmatpush3.bf16.xpose.msra.mxu0 %v872_v55 }
 0x2cc   : > { %v988_v56 = vpop.permute.xlu1 %987  ;;  %2472 = vmatprep.subr.bf16.mxu0 %v3068_v4 }
 0x2cd   : > { %v993_v58 = vsel %vm750_vm2, %v988_v56, 0 }
 0x2d0   : > { %v986_v57 = vpop.permute.xlu1 %985 }
 0x2d2   : > { %2463 = vmatmul.mubr.msk.bf16.vlgmr.msra.gmra.mrb[8].mxu0 %vm750_vm2, %v864_v53 }
 0x2d3   : > { %2473 = vmatpush3.bf16.xpose.msra.mxu0 %v993_v58  ;;  %2474 = vmatprep.mubr.msk.bf16.mxu0 %vm3070_vm0, %v3068_v4 }
 0x2d4   : > { %2484 = vmatprep.subr.bf16.mxu0 %v3068_v4  ;;  %v1108_v59 = vpop.permute.xlu1 %1107 }
 0x2d5   : > { %v1113_v60 = vsel %vm750_vm2, %v1108_v59, 0 }
 0x2d8   : > { %v1106_v61 = vpop.permute.xlu1 %1105 }
 0x2da   : > { %2475 = vmatmul.mubr.msk.bf16.vlgmr.msra.gmra.mrb[12].mxu0 %vm750_vm2, %v986_v57 }
 0x2db   : > { %2485 = vmatpush3.bf16.xpose.msra.mxu0 %v1113_v60  ;;  %2486 = vmatprep.mubr.msk.bf16.mxu0 %vm3070_vm0, %v3068_v4 }
 0x2dc   : > { %2496 = vmatprep.subr.bf16.mxu0 %v3068_v4 }
 0x2e2   : > { %2487 = vmatmul.mubr.msk.bf16.vlgmr.msra.gmra.mrb[16].mxu0 %vm750_vm2, %v1106_v61 }
 0x2e3   : > { %2512 = vmatprep.mubr.msk.bf16.mxu0 %vm3070_vm0, %v3068_v4 }
 0x332   : > { %v791_v2 = vpop.f32.mrb[4].mxu0 }
 0x333   : > { %v798_v3 = vsel %vm797_vm3, %v791_v2, -1e+30  ;;  %v2452_v5 = vpop.f32.mrb[5].mxu0 }
 0x334   : > { %v794_v6 = vpop.f32.mrb[6].mxu0  ;;  %v800_v7 = vsel %vm799_vm4, %v798_v3, -inf }
 0x335   : > { %801 = vmax.xlane.f32.xlu1 %v800_v7  ;;  %v2453_v8 = vpop.f32.mrb[7].mxu0 }
 0x3a5   : > { %v908_v9 = vpop.f32.mrb[8].mxu0 }
 0x3a6   : > { %v914_v10 = vsel %vm797_vm3, %v908_v9, -1e+30  ;;  %v2464_v11 = vpop.f32.mrb[9].mxu0 }
 0x3a7   : > { %v911_v12 = vpop.f32.mrb[10].mxu0  ;;  %v915_v13 = vsel %vm799_vm4, %v914_v10, -inf }
 0x3a8   : > { %916 = vmax.xlane.f32.xlu0 %v915_v13  ;;  %v2465_v14 = vpop.f32.mrb[11].mxu0  ;;  %v2670_v13 = vld [vmem:[%s3410_s19] sm:$0xff]  }
 0x3a9   : > { %2497 = vmatpush3.bf16.msra.mxu0 %v2670_v13  ;;  %v2671_v14 = vld [vmem:[%s3410_s19 + $0x8] sm:$0xff]   ;;  %v2725_v13 = vld [vmem:[%s3412_s15 + $0x15c] ss:$24 sps:$4 sm:$0xff]  }
 0x3aa   : > { %2498 = vmatprep.subr.bf16.mxu0 %v3068_v4 }
 0x3ad   : > { %v1029_v15 = vpop.f32.mrb[12].mxu0  ;;  %2499 = vmatpush3.bf16.msra.mxu0 %v2671_v14  ;;  %v2720_v14 = vld [vmem:[%s3412_s15 + $0x150] ss:$24 sps:$4 sm:$0xff]  }
 0x3ae   : > { %v1035_v16 = vsel %vm797_vm3, %v1029_v15, -1e+30  ;;  %v2476_v17 = vpop.f32.mrb[13].mxu0  ;;  %2500 = vmatprep.subr.bf16.mxu0 %v3068_v4  ;;  %v2672_v15 = vld [vmem:[%s3410_s19 + $0x10] sm:$0xff]  }
 0x3af   : > { %v1032_v18 = vpop.f32.mrb[14].mxu0  ;;  %v1036_v19 = vsel %vm799_vm4, %v1035_v16, -inf  ;;  %v2674_v17 = vld [vmem:[%s3410_s19 + $0x20] sm:$0xff]  }
 0x3b0   : > { %1037 = vmax.xlane.f32.xlu1 %v1036_v19  ;;  %v2477_v20 = vpop.f32.mrb[15].mxu0 }
 0x3b1   : > { %2501 = vmatpush3.bf16.msra.mxu0 %v2672_v15  ;;  %v2723_v15 = vld [vmem:[%s3412_s15 + $0x158] ss:$24 sps:$4 sm:$0xff]  }
 0x3b2   : > { %2502 = vmatprep.subr.bf16.mxu0 %v3068_v4 }
 0x3b5   : > { %v1149_v21 = vpop.f32.mrb[16].mxu0 }
 0x3b6   : > { %v1155_v22 = vsel %vm797_vm3, %v1149_v21, -1e+30  ;;  %v2488_v23 = vpop.f32.mrb[17].mxu0  ;;  %v2675_v21 = vld [vmem:[%s3410_s19 + $0x28] sm:$0xff]  }
 0x3b7   : > { %v1152_v24 = vpop.f32.mrb[18].mxu0  ;;  %v1156_v26 = vsel %vm799_vm4, %v1155_v22, -inf }
 0x3b8   : > { %1157 = vmax.xlane.f32.xlu0 %v1156_v26  ;;  %v2489_v27 = vpop.f32.mrb[19].mxu0  ;;  %v2676_v24 = vld [vmem:[%s3410_s19 + $0x30] sm:$0xff]  }
 0x3b9   : > { %v2677_v27 = vld [vmem:[%s3410_s19 + $0x38] sm:$0xff]  }
 0x3c2   : > { %v802_v28 = vpop.xlane.xlu1 %801 }
 0x3c3   : > { %v803_v29 = vsub.f32 %v798_v3, %v802_v28 }
 0x3c5   : > { %v804_v30 = vmul.f32 1.442695, %v803_v29 }
 0x3c7   : > { %2776 = vpow2.f32 %v804_v30 }
 0x3d1   : > { %v2777_v31 = vpop.eup %2776 }
 0x3d2   : > { %v806_v32 = vsel %vm799_vm4, %v2777_v31, 0.0 }
 0x3d3   : > { %807 = vadd.xlane.f32.xlu1 %v806_v32 }
 0x3e4   : > { %928 = vrot.lane.b32.xlu1 %v3469_v41, %s3071_s29 }
 0x435   : > { %v917_v33 = vpop.xlane.xlu0 %916 }
 0x436   : > { %v918_v34 = vsub.f32 %v914_v10, %v917_v33 }
 0x438   : > { %v919_v35 = vmul.f32 1.442695, %v918_v34 }
 0x43a   : > { %2778 = vpow2.f32 %v919_v35 }
 0x43d   : > { %v1038_v36 = vpop.xlane.xlu1 %1037 }
 0x43e   : > { %v1039_v37 = vsub.f32 %v1035_v16, %v1038_v36  ;;  %v2673_v16 = vld [vmem:[%s3410_s19 + $0x18] sm:$0xff]  }
 0x43f   : > { %2503 = vmatpush3.bf16.msra.mxu0 %v2673_v16  ;;  %v2728_v16 = vld [vmem:[%s3412_s15 + $0x14] ss:$24 sps:$4 sm:$0xff]  }
 0x440   : > { %v1040_v38 = vmul.f32 1.442695, %v1039_v37  ;;  %2504 = vmatprep.subr.bf16.mxu0 %v3068_v4 }
 0x442   : > { %2780 = vpow2.f32 %v1040_v38 }
 0x443   : > { %2505 = vmatpush3.bf16.msra.mxu0 %v2674_v17 }
 0x444   : > { %v2779_v39 = vpop.eup %2778  ;;  %2506 = vmatprep.subr.bf16.mxu0 %v3068_v4 }
 0x445   : > { %v1158_v40 = vpop.xlane.xlu0 %1157  ;;  %v921_v42 = vsel %vm799_vm4, %v2779_v39, 0.0 }
 0x446   : > { %v1159_v43 = vsub.f32 %v1155_v22, %v1158_v40  ;;  %922 = vadd.xlane.f32.xlu0 %v921_v42  ;;  %v2678_v42 = vld [vmem:[%s3412_s15] ss:$24 sps:$4 sm:$0xff]  }
 0x447   : > { %2507 = vmatpush3.bf16.msra.mxu0 %v2675_v21  ;;  %v2278_v21 = vld [vmem:[%s473_s30] ss:$0 sm:$0xff] }
 0x448   : > { %v1160_v44 = vmul.f32 1.442695, %v1159_v43  ;;  %2508 = vmatprep.subr.bf16.mxu0 %v3068_v4  ;;  %v2680_v43 = vld [vmem:[%s3412_s15 + $0x4] ss:$24 sps:$4 sm:$0xff]  }
 0x44a   : > { %2782 = vpow2.f32 %v1160_v44  ;;  %v2681_v44 = vld [vmem:[%s3412_s15 + $0x8] ss:$24 sps:$4 sm:$0xff]  }
 0x44b   : > { %2509 = vmatpush3.bf16.msra.mxu0 %v2676_v24  ;;  %v2726_v24 = vld [vmem:[%s3412_s15 + $0x10] ss:$24 sps:$4 sm:$0xff]  }
 0x44c   : > { %v2781_v45 = vpop.eup %2780  ;;  %2510 = vmatprep.subr.bf16.mxu0 %v3068_v4 }
 0x44d   : > { %v1042_v46 = vsel %vm799_vm4, %v2781_v45, 0.0 }
 0x44e   : > { %1043 = vadd.xlane.f32.xlu1 %v1042_v46  ;;  %v2686_v46 = vld [vmem:[%s3412_s15 + $0x34] ss:$24 sps:$4 sm:$0xff]  }
 0x44f   : > { %2511 = vmatpush3.bf16.msra.mxu0 %v2677_v27  ;;  %v2731_v27 = vld [vmem:[%s3412_s15 + $0x44] ss:$24 sps:$4 sm:$0xff]  }
 0x454   : > { %v2783_v47 = vpop.eup %2782 }
 0x455   : > { %v1162_v48 = vsel %vm799_vm4, %v2783_v47, 0.0 }
 0x456   : > { %1163 = vadd.xlane.f32.xlu0 %v1162_v48  ;;  %v2684_v48 = vld [vmem:[%s3412_s15 + $0x30] ss:$24 sps:$4 sm:$0xff]  }
 0x45f   : > { %1168 = vrot.lane.b32.xlu1 %v3469_v41, %s3073_s26 }
 0x460   : > { %v808_v49 = vpop.xlane.xlu1 %807 }
 0x461   : > { %2784 = vrcp.f32 %v808_v49  ;;  %v2687_v49 = vld [vmem:[%s3412_s15 + $0x38] ss:$24 sps:$4 sm:$0xff]  }
 0x464   : > { %v929_v52 = vpop.permute.xlu1 %928 }
 0x465   : > { %v934_v54 = vsel %vm815_vm1, %v929_v52, 0  ;;  %v2690_v52 = vld [vmem:[%s3412_s15 + $0x60] ss:$24 sps:$4 sm:$0xff]  }
 0x46b   : > { %v2785_v50 = vpop.eup %2784 }
 0x46c   : > { %v810_v51 = vmul.f32 %v2785_v50, %v2777_v31  ;;  %1048 = vrot.lane.b32.xlu0 %v3469_v41, %s3072_s23  ;;  %v2692_v50 = vld [vmem:[%s3412_s15 + $0x64] ss:$24 sps:$4 sm:$0xff]  }
 0x46e   : > { %v811_v53 = vpack.c.bf16 %v810_v51, %v810_v51  ;;  %v2695_v51 = vld [vmem:[%s3412_s15 + $0x6c] ss:$24 sps:$4 sm:$0xff]  }
 0x470   : > { %2457 = vmatmul.mubr.msk.bf16.vlgmr.msra.gmra.mrb[4].mxu1 %vm799_vm4, %v811_v53  ;;  %v2693_v53 = vld [vmem:[%s3412_s15 + $0x68] ss:$24 sps:$4 sm:$0xff]  }
 0x471   : > { %2467 = vmatpush3.bf16.msra.mxu1 %v934_v54  ;;  %2468 = vmatprep.mubr.msk.bf16.mxu1 %vm3070_vm0, %v3068_v4 }
 0x472   : > { %2478 = vmatprep.subr.bf16.mxu1 %v3068_v4 }
 0x4d3   : > { %v923_v55 = vpop.xlane.xlu0 %922 }
 0x4d4   : > { %2786 = vrcp.f32 %v923_v55 }
 0x4db   : > { %v1044_v56 = vpop.xlane.xlu1 %1043 }
 0x4dc   : > { %2788 = vrcp.f32 %v1044_v56 }
 0x4de   : > { %v2787_v57 = vpop.eup %2786 }
 0x4df   : > { %v925_v58 = vmul.f32 %v2787_v57, %v2779_v39  ;;  %v1169_v0 = vpop.permute.xlu1 %1168 }
 0x4e0   : > { %v1174_v3 = vsel %vm815_vm1, %v1169_v0, 0  ;;  %v2705_v0 = vld [vmem:[%s3412_s15 + $0xc8] ss:$24 sps:$4 sm:$0xff]  }
 0x4e1   : > { %v926_v59 = vpack.c.bf16 %v925_v58, %v925_v58 }
 0x4e3   : > { %2469 = vmatmul.mubr.msk.bf16.vlgmr.msra.gmra.mrb[8].mxu1 %vm799_vm4, %v926_v59  ;;  %v1164_v41 = vpop.xlane.xlu0 %1163 }
 0x4e4   : > { %2790 = vrcp.f32 %v1164_v41  ;;  %2480 = vmatprep.mubr.msk.bf16.mxu1 %vm3070_vm0, %v3068_v4  ;;  %v2698_v41 = vld [vmem:[%s3412_s15 + $0x94] ss:$24 sps:$4 sm:$0xff]  }
 0x4e6   : > { %v2789_v60 = vpop.eup %2788 }
 0x4e7   : > { %v1046_v61 = vmul.f32 %v2789_v60, %v2781_v45  ;;  %v1049_v62 = vpop.permute.xlu0 %1048  ;;  %v2683_v45 = vld [vmem:[%s3412_s15 + $0xc] ss:$24 sps:$4 sm:$0xff]   ;;  %v2696_v60 = vld [vmem:[%s3412_s15 + $0x90] ss:$24 sps:$4 sm:$0xff]  }
 0x4e8   : > { %v1054_v63 = vsel %vm815_vm1, %v1049_v62, 0  ;;  %1676 = vmatprep.subr.bf16.mxu0 %v2683_v45  ;;  %v2699_v62 = vld [vmem:[%s3412_s15 + $0x98] ss:$24 sps:$4 sm:$0xff]   ;;  %v2754_v45 = vld [vmem:[%s3414_s25 + $0x8] sm:$0xff]  }
 0x4e9   : > { %2479 = vmatpush3.bf16.msra.mxu1 %v1054_v63  ;;  %v1047_v2 = vpack.c.bf16 %v1046_v61, %v1046_v61  ;;  %v2701_v61 = vld [vmem:[%s3412_s15 + $0x9c] ss:$24 sps:$4 sm:$0xff]   ;;  %v2702_v63 = vld [vmem:[%s3412_s15 + $0xc0] ss:$24 sps:$4 sm:$0xff]  }
 0x4ea   : > { %2490 = vmatprep.subr.bf16.mxu1 %v3068_v4 }
 0x4ec   : > { %2481 = vmatmul.mubr.msk.bf16.vlgmr.msra.gmra.mrb[12].mxu1 %vm799_vm4, %v1047_v2  ;;  %v2707_v2 = vld [vmem:[%s3412_s15 + $0xcc] ss:$24 sps:$4 sm:$0xff]  }
 0x4ed   : > { %2491 = vmatpush3.bf16.msra.mxu1 %v1174_v3  ;;  %2492 = vmatprep.mubr.msk.bf16.mxu1 %vm3070_vm0, %v3068_v4  ;;  %v2710_v3 = vld [vmem:[%s3412_s15 + $0xf4] ss:$24 sps:$4 sm:$0xff]  }
 0x4ee   : > { %v2791_v5 = vpop.eup %2790  ;;  %1635 = vmatprep.subr.bf16.mxu1 %v2680_v43  ;;  %v2752_v43 = vld [vmem:[%s3414_s25 + $0x80] sm:$0xff]  }
 0x4ef   : > { %v1166_v6 = vmul.f32 %v2791_v5, %v2783_v47  ;;  %v2689_v47 = vld [vmem:[%s3412_s15 + $0x3c] ss:$24 sps:$4 sm:$0xff]   ;;  %v2708_v5 = vld [vmem:[%s3412_s15 + $0xf0] ss:$24 sps:$4 sm:$0xff]  }
 0x4f1   : > { %v1167_v7 = vpack.c.bf16 %v1166_v6, %v1166_v6  ;;  %v2713_v6 = vld [vmem:[%s3412_s15 + $0xfc] ss:$24 sps:$4 sm:$0xff]  }
 0x4f4   : > { %2493 = vmatmul.mubr.msk.bf16.vlgmr.msra.gmra.mrb[16].mxu1 %vm799_vm4, %v1167_v7  ;;  %v2711_v7 = vld [vmem:[%s3412_s15 + $0xf8] ss:$24 sps:$4 sm:$0xff]  }
 0x4f5   : > { %1667 = vmatprep.mubr.bf16.mxu1 %v3069_v25  ;;  %1636 = vmatpush1.bf16.msra.mxu1 %v2678_v42  ;;  %v2751_v42 = vld [vmem:[%s3414_s25] sm:$0xff]  }
 0x4f6   : > { %1637 = vmatprep.subr.bf16.mxu1 %v2686_v46  ;;  %v2755_v46 = vld [vmem:[%s3414_s25 + $0x88] sm:$0xff]  }
 0x4f9   : > { %1638 = vmatpush1.bf16.msra.mxu1 %v2684_v48  ;;  %v2757_v48 = vld [vmem:[%s3414_s25 + $0x10] sm:$0xff]  }
 0x4fa   : > { %1639 = vmatprep.subr.bf16.mxu1 %v2692_v50  ;;  %v2759_v50 = vld [vmem:[%s3414_s25 + $0x58] sm:$0xff]  }
 0x4fd   : > { %1640 = vmatpush1.bf16.msra.mxu1 %v2690_v52  ;;  %v2761_v52 = vld [vmem:[%s3414_s25 + $0x98] sm:$0xff]  }
 0x4fe   : > { %1641 = vmatprep.subr.bf16.mxu1 %v2698_v41  ;;  %v2768_v41 = vld [vmem:[%s3414_s25 + $0x70] sm:$0xff]  }
 0x501   : > { %1642 = vmatpush1.bf16.msra.mxu1 %v2696_v60  ;;  %v2769_v60 = vld [vmem:[%s3414_s25 + $0x30] sm:$0xff]  }
 0x543   : > { %v853_v8 = vpop.f32.mrb[4].mxu1 }
 0x544   : > { %v859_v9 = vpack.c.bf16 %v853_v8, %v853_v8  ;;  %v2458_v10 = vpop.f32.mrb[5].mxu1  ;;  %v2716_v8 = vld [vmem:[%s3412_s15 + $0x124] ss:$24 sps:$4 sm:$0xff]  }
 0x545   : > { %v856_v11 = vpop.f32.mrb[6].mxu1  ;;  %v2714_v10 = vld [vmem:[%s3412_s15 + $0x120] ss:$24 sps:$4 sm:$0xff]  }
 0x546   : > { %861 = vst.msk [vmem:[#allocation3] sm:$0xf] %vm860_vm5, %v859_v9  ;;  %v2459_v12 = vpop.f32.mrb[7].mxu1  ;;  %v2719_v9 = vld [vmem:[%s3412_s15 + $0x12c] ss:$24 sps:$4 sm:$0xff]  }
 0x547   : > { %v2717_v11 = vld [vmem:[%s3412_s15 + $0x128] ss:$24 sps:$4 sm:$0xff]   ;;  %v2722_v12 = vld [vmem:[%s3412_s15 + $0x154] ss:$24 sps:$4 sm:$0xff]  }
 0x5b6   : > { %v970_v18 = vpop.f32.mrb[8].mxu1 }
 0x5b7   : > { %v2360_v19 = vpack.c.bf16 %v970_v18, %v970_v18  ;;  %v2470_v20 = vpop.f32.mrb[9].mxu1 }
 0x5b8   : > { %v973_v22 = vpop.f32.mrb[10].mxu1 }
 0x5b9   : > { %980 = vrot.lane.b32.xlu1 %v2360_v19, %s3073_s26  ;;  %v2471_v23 = vpop.f32.mrb[11].mxu1 }
 0x5bf   : > { %v1090_v26 = vpop.f32.mrb[12].mxu1 }
 0x5c0   : > { %v2361_v28 = vpack.c.bf16 %v1090_v26, %v1090_v26  ;;  %v2482_v29 = vpop.f32.mrb[13].mxu1 }
 0x5c1   : > { %v1093_v30 = vpop.f32.mrb[14].mxu1  ;;  %v2734_v29 = vld [vmem:[%s3412_s15 + $0x74] ss:$24 sps:$4 sm:$0xff]  }
 0x5c2   : > { %1100 = vrot.lane.b32.xlu0 %v2361_v28, %s3072_s23  ;;  %v2483_v31 = vpop.f32.mrb[15].mxu1  ;;  %v2729_v28 = vld [vmem:[%s3412_s15 + $0x40] ss:$24 sps:$4 sm:$0xff]   ;;  %v2732_v30 = vld [vmem:[%s3412_s15 + $0x70] ss:$24 sps:$4 sm:$0xff]  }
 0x5c3   : > { %v2737_v31 = vld [vmem:[%s3412_s15 + $0xa4] ss:$24 sps:$4 sm:$0xff]  }
 0x5c7   : > { %v1210_v32 = vpop.f32.mrb[16].mxu1 }
 0x5c8   : > { %v2362_v33 = vpack.c.bf16 %v1210_v32, %v1210_v32  ;;  %v2494_v34 = vpop.f32.mrb[17].mxu1  ;;  %v2735_v32 = vld [vmem:[%s3412_s15 + $0xa0] ss:$24 sps:$4 sm:$0xff]  }
 0x5c9   : > { %v1213_v35 = vpop.f32.mrb[18].mxu1  ;;  %v2738_v34 = vld [vmem:[%s3412_s15 + $0xd0] ss:$24 sps:$4 sm:$0xff]  }
 0x5ca   : > { %1220 = vrot.lane.b32.xlu1 %v2362_v33, %s3071_s29  ;;  %v2495_v36 = vpop.f32.mrb[19].mxu1  ;;  %v2740_v33 = vld [vmem:[%s3412_s15 + $0xd4] ss:$24 sps:$4 sm:$0xff]   ;;  %v2743_v35 = vld [vmem:[%s3412_s15 + $0x104] ss:$24 sps:$4 sm:$0xff]  }
 0x5cb   : > { %v2746_v36 = vld [vmem:[%s3412_s15 + $0x134] ss:$24 sps:$4 sm:$0xff]  }
 0x62b   : > { %v981_v37 = vpop.permute.xlu1 %980 }
 0x62c   : > { %984 = vst.msk [vmem:[#allocation3] sm:$0xf] %vm983_vm6, %v981_v37  ;;  %v2744_v37 = vld [vmem:[%s3412_s15 + $0x130] ss:$24 sps:$4 sm:$0xff]  }
 0x634   : > { %v1101_v38 = vpop.permute.xlu0 %1100 }
 0x635   : > { %1104 = vst.msk [vmem:[#allocation3] sm:$0xf] %vm1103_vm7, %v1101_v38  ;;  %v2749_v38 = vld [vmem:[%s3412_s15 + $0x164] ss:$24 sps:$4 sm:$0xff]  }
 0x63c   : > { %v1221_v39 = vpop.permute.xlu1 %1220 }
 0x63d   : > { %1224 = vst.msk [vmem:[#allocation3] sm:$0xf] %vm1223_vm8, %v1221_v39  ;;  %v2747_v39 = vld [vmem:[%s3412_s15 + $0x160] ss:$24 sps:$4 sm:$0xff]  }
 0x644   : > { %v1225_v40 = vld [vmem:[#allocation3] sm:$0xf] }
 0x645   : > { %2513 = vmatmul.mubr.bf16.vlgmr.msra.gmra.mrb[20].mxu0 %v1225_v40  ;;  %v2750_v40 = vld [vmem:[%s3414_s25 + $0x40] sm:$0xff]  }
 0x646   : > { %1708 = vmatprep.mubr.bf16.mxu0 %v3069_v25  ;;  %1677 = vmatpush1.bf16.msra.mxu0 %v2681_v44  ;;  %v2753_v44 = vld [vmem:[%s3414_s25 + $0x48] sm:$0xff]  }
 0x647   : > { %1678 = vmatprep.subr.bf16.mxu0 %v2689_v47  ;;  %v2756_v47 = vld [vmem:[%s3414_s25 + $0x50] sm:$0xff]  }
 0x64a   : > { %1679 = vmatpush1.bf16.msra.mxu0 %v2687_v49  ;;  %v2758_v49 = vld [vmem:[%s3414_s25 + $0x90] sm:$0xff]  }
 0x64b   : > { %1680 = vmatprep.subr.bf16.mxu0 %v2695_v51  ;;  %v2760_v51 = vld [vmem:[%s3414_s25 + $0x18] sm:$0xff]  }
 0x64e   : > { %1681 = vmatpush1.bf16.msra.mxu0 %v2693_v53  ;;  %v2762_v53 = vld [vmem:[%s3414_s25 + $0x60] sm:$0xff]  }
 0x64f   : > { %1682 = vmatprep.subr.bf16.mxu0 %v2701_v61  ;;  %v2770_v61 = vld [vmem:[%s3414_s25 + $0xb0] sm:$0xff]  }
 0x652   : > { %1683 = vmatpush1.bf16.msra.mxu0 %v2699_v62  ;;  %v2771_v62 = vld [vmem:[%s3414_s25 + $0x78] sm:$0xff]  }
 0x653   : > { %1684 = vmatprep.subr.bf16.mxu0 %v2707_v2 }
 0x656   : > { %1685 = vmatpush1.bf16.msra.mxu0 %v2705_v0 }
 0x657   : > { %1686 = vmatprep.subr.bf16.mxu0 %v2713_v6 }
 0x65a   : > { %1687 = vmatpush1.bf16.msra.mxu0 %v2711_v7 }
 0x65b   : > { %1688 = vmatprep.subr.bf16.mxu0 %v2719_v9 }
 0x65e   : > { %1689 = vmatpush1.bf16.msra.mxu0 %v2717_v11 }
 0x65f   : > { %1690 = vmatprep.subr.bf16.mxu0 %v2725_v13 }
 0x662   : > { %1691 = vmatpush1.bf16.msra.mxu0 %v2723_v15 }
 0x663   : > { %2397 = vmatprep.subr.bf16.mxu0 %v2750_v40 }
 0x718   : > { %v1324_v54 = vpop.f32.mrb[20].mxu0 }
 0x719   : > { %v3566_v55 = vadd.f32 %v1324_v54, %v3418_v1  ;;  %v2514_v56 = vpop.f32.mrb[21].mxu0  ;;  %v2704_v1 = vld [vmem:[%s3412_s15 + $0xc4] ss:$24 sps:$4 sm:$0xff]  }
 0x71a   : > { %v1327_v57 = vpop.f32.mrb[22].mxu0  ;;  %1643 = vmatprep.subr.bf16.mxu1 %v2704_v1  ;;  %v2763_v54 = vld [vmem:[%s3414_s25 + $0x20] sm:$0xff]   ;;  %v2772_v1 = vld [vmem:[%s3414_s25 + $0x38] sm:$0xff]  }
 0x71b   : > { %v2515_v58 = vpop.f32.mrb[23].mxu0  ;;  %v1331_v59 = vmul.f32 %v3566_v55, %v3566_v55  ;;  %1644 = vmatpush1.bf16.msra.mxu1 %v2702_v63  ;;  %v2764_v56 = vld [vmem:[%s3414_s25 + $0xa0] sm:$0xff]   ;;  %v2765_v57 = vld [vmem:[%s3414_s25 + $0x68] sm:$0xff]   ;;  %v2773_v63 = vld [vmem:[%s3414_s25 + $0xb8] sm:$0xff]  }
 0x71c   : > { %1645 = vmatprep.subr.bf16.mxu1 %v2710_v3  ;;  %v2766_v58 = vld [vmem:[%s3414_s25 + $0x28] sm:$0xff]  }
 0x71d   : > { %1332 = vadd.xlane.f32.xlu0 %v1331_v59  ;;  %v2767_v59 = vld [vmem:[%s3414_s25 + $0xa8] sm:$0xff]  }
 0x71f   : > { %1646 = vmatpush1.bf16.msra.mxu1 %v2708_v5 }
 0x720   : > { %1647 = vmatprep.subr.bf16.mxu1 %v2716_v8 }
 0x723   : > { %1648 = vmatpush1.bf16.msra.mxu1 %v2714_v10 }
 0x724   : > { %1649 = vmatprep.subr.bf16.mxu1 %v2722_v12 }
 0x727   : > { %1650 = vmatpush1.bf16.msra.mxu1 %v2720_v14 }
 0x728   : > { %1717 = vmatprep.subr.bf16.mxu1 %v2728_v16 }
 0x7aa   : > { %v1333_v17 = vpop.xlane.xlu0 %1332 }
 0x7ab   : > { %v1334_v18 = vmul.f32 0.0078125, %v1333_v17 }
 0x7ad   : > { %v1335_v19 = vadd.f32 1e-05, %v1334_v18 }
 0x7af   : > { %2792 = vrsqrt.f32 %v1335_v19 }
 0x7b9   : > { %v2793_v20 = vpop.eup %2792 }
 0x7ba   : > { %v1337_v22 = vmul.f32 %v2793_v20, %v3566_v55 }
 0x7bc   : > { %v1345_v23 = vmul.f32 %v2278_v21, %v1337_v22 }
 0x7be   : > { %v1346_v26 = vpack.c.bf16 %v1345_v23, %v1345_v23 }
 0x7c0   : > { %1668 = vmatmul.mubr.bf16.vlgmr.msra.gmra.mrb[20].mxu1 %v1346_v26  ;;  %1709 = vmatmul.mubr.bf16.vlgmr.msra.gmra.mrb[24].mxu0 %v1346_v26 }
 0x7c1   : > { %1718 = vmatpush1.bf16.msra.mxu1 %v2726_v24  ;;  %1749 = vmatprep.mubr.bf16.mxu1 %v3069_v25  ;;  %v2741_v25 = vld [vmem:[%s3412_s15 + $0x100] ss:$24 sps:$4 sm:$0xff]  }
 0x7c2   : > { %1719 = vmatprep.subr.bf16.mxu1 %v2731_v27  ;;  %2398 = vmatpush3.bf16.msra.mxu0 %v2751_v42 }
 0x7c3   : > { %2399 = vmatprep.subr.bf16.mxu0 %v2753_v44 }
 0x7c5   : > { %1720 = vmatpush1.bf16.msra.mxu1 %v2729_v28 }
 0x7c6   : > { %1721 = vmatprep.subr.bf16.mxu1 %v2734_v29  ;;  %2400 = vmatpush3.bf16.msra.mxu0 %v2754_v45 }
 0x7c7   : > { %2401 = vmatprep.subr.bf16.mxu0 %v2756_v47 }
 0x7c9   : > { %1722 = vmatpush1.bf16.msra.mxu1 %v2732_v30 }
 0x7ca   : > { %1723 = vmatprep.subr.bf16.mxu1 %v2737_v31  ;;  %2402 = vmatpush3.bf16.msra.mxu0 %v2757_v48 }
 0x7cb   : > { %2403 = vmatprep.subr.bf16.mxu0 %v2759_v50 }
 0x7cd   : > { %1724 = vmatpush1.bf16.msra.mxu1 %v2735_v32 }
 0x7ce   : > { %1725 = vmatprep.subr.bf16.mxu1 %v2740_v33  ;;  %2404 = vmatpush3.bf16.msra.mxu0 %v2760_v51 }
 0x7cf   : > { %2405 = vmatprep.subr.bf16.mxu0 %v2762_v53 }
 0x7d1   : > { %1726 = vmatpush1.bf16.msra.mxu1 %v2738_v34 }
 0x7d2   : > { %1727 = vmatprep.subr.bf16.mxu1 %v2743_v35  ;;  %2406 = vmatpush3.bf16.msra.mxu0 %v2763_v54 }
 0x7d3   : > { %2407 = vmatprep.subr.bf16.mxu0 %v2765_v57 }
 0x7d5   : > { %1728 = vmatpush1.bf16.msra.mxu1 %v2741_v25 }
 0x7d6   : > { %1729 = vmatprep.subr.bf16.mxu1 %v2746_v36  ;;  %2408 = vmatpush3.bf16.msra.mxu0 %v2766_v58 }
 0x7d7   : > { %2409 = vmatprep.subr.bf16.mxu0 %v2768_v41 }
 0x7d9   : > { %1730 = vmatpush1.bf16.msra.mxu1 %v2744_v37 }
 0x7da   : > { %1731 = vmatprep.subr.bf16.mxu1 %v2749_v38  ;;  %2410 = vmatpush3.bf16.msra.mxu0 %v2769_v60 }
 0x7db   : > { %2411 = vmatprep.subr.bf16.mxu0 %v2771_v62 }
 0x7dd   : > { %1732 = vmatpush1.bf16.msra.mxu1 %v2747_v39 }
 0x7de   : > { %2516 = vmatprep.subr.bf16.mxu1 %v3068_v4  ;;  %2412 = vmatpush3.bf16.msra.mxu0 %v2772_v1 }
 0x7e0   : > { %1750 = vmatmul.mubr.bf16.vlgmr.msra.gmra.mrb[24].mxu1 %v1346_v26 }
 0x7e1   : > { %2532 = vmatprep.mubr.msk.bf16.mxu1 %vm3070_vm0, %v3068_v4  ;;  %2517 = vmatpush3.bf16.msra.mxu1 %v2752_v43 }
 0x7e2   : > { %2518 = vmatprep.subr.bf16.mxu1 %v3068_v4 }
 0x7e5   : > { %2519 = vmatpush3.bf16.msra.mxu1 %v2755_v46 }
 0x7e6   : > { %2520 = vmatprep.subr.bf16.mxu1 %v3068_v4 }
 0x7e9   : > { %2521 = vmatpush3.bf16.msra.mxu1 %v2758_v49 }
 0x7ea   : > { %2522 = vmatprep.subr.bf16.mxu1 %v3068_v4 }
 0x7ed   : > { %2523 = vmatpush3.bf16.msra.mxu1 %v2761_v52 }
 0x7ee   : > { %2524 = vmatprep.subr.bf16.mxu1 %v3068_v4 }
 0x7f1   : > { %2525 = vmatpush3.bf16.msra.mxu1 %v2764_v56 }
 0x7f2   : > { %2526 = vmatprep.subr.bf16.mxu1 %v3068_v4 }
 0x7f5   : > { %2527 = vmatpush3.bf16.msra.mxu1 %v2767_v59 }
 0x7f6   : > { %2528 = vmatprep.subr.bf16.mxu1 %v3068_v4 }
 0x7f9   : > { %2529 = vmatpush3.bf16.msra.mxu1 %v2770_v61 }
 0x7fa   : > { %2530 = vmatprep.subr.bf16.mxu1 %v3068_v4 }
 0x7fd   : > { %2531 = vmatpush3.bf16.msra.mxu1 %v2773_v63 }
 0x893   : > { %v1669_v0 = vpop.f32.mrb[20].mxu1  ;;  %v1710_v2 = vpop.f32.mrb[24].mxu0 }
 0x894   : > { %v2327_v3 = vmul.f32 -1.442695, %v1669_v0  ;;  %v2329_v5 = vmul.f32 -1.442695, %v1710_v2  ;;  %v1671_v6 = vpop.f32.mrb[21].mxu1  ;;  %v1712_v7 = vpop.f32.mrb[25].mxu0 }
 0x895   : > { %v2328_v8 = vmul.f32 -1.442695, %v1671_v6  ;;  %v1673_v9 = vpop.f32.mrb[22].mxu1  ;;  %v1714_v10 = vpop.f32.mrb[26].mxu0 }
 0x896   : > { %2794 = vpow2.f32 %v2327_v3  ;;  %v1674_v11 = vpop.f32.mrb[23].mxu1  ;;  %v1715_v12 = vpop.f32.mrb[27].mxu0 }
 0x897   : > { %2796 = vpow2.f32 %v2329_v5 }
 0x898   : > { %2798 = vpow2.f32 %v2328_v8 }
 0x8a0   : > { %v2795_v4 = vpop.eup %2794 }
 0x8a1   : > { %v2797_v13 = vpop.eup %2796  ;;  %v1767_v14 = vadd.f32 1.0, %v2795_v4 }
 0x8a2   : > { %v2799_v15 = vpop.eup %2798  ;;  %v1769_v16 = vadd.f32 1.0, %v2797_v13 }
 0x8a3   : > { %2800 = vrcp.f32 %v1767_v14  ;;  %v1768_v17 = vadd.f32 1.0, %v2799_v15 }
 0x8a5   : > { %2802 = vrcp.f32 %v1768_v17 }
 0x8a6   : > { %2804 = vrcp.f32 %v1769_v16 }
 0x8ad   : > { %v2801_v18 = vpop.eup %2800 }
 0x8ae   : > { %v1776_v19 = vmul.f32 %v2801_v18, %v1669_v0 }
 0x8af   : > { %v2803_v20 = vpop.eup %2802 }
 0x8b0   : > { %v2805_v21 = vpop.eup %2804  ;;  %v1779_v22 = vmul.f32 %v1776_v19, %v1712_v7  ;;  %v1777_v23 = vmul.f32 %v2803_v20, %v1671_v6 }
 0x8b1   : > { %v1778_v24 = vmul.f32 %v2805_v21, %v1710_v2 }
 0x8b2   : > { %v1782_v33 = vpack.c.bf16 %v1779_v22, %v1779_v22 }
 0x8b3   : > { %v1751_v26 = vpop.f32.mrb[24].mxu1 }
 0x8b4   : > { %v1780_v27 = vmul.f32 %v1777_v23, %v1751_v26  ;;  %v1753_v28 = vpop.f32.mrb[25].mxu1 }
 0x8b5   : > { %v1781_v29 = vmul.f32 %v1778_v24, %v1753_v28  ;;  %v1755_v30 = vpop.f32.mrb[26].mxu1 }
 0x8b6   : > { %v1783_v31 = vpack.c.bf16 %v1780_v27, %v1780_v27  ;;  %v1756_v32 = vpop.f32.mrb[27].mxu1 }
 0x8b7   : > { %v1784_v34 = vpack.c.bf16 %v1781_v29, %v1781_v29 }
 0x8b8   : > { %2009 = vmatprep.mubr.bf16.mxu0 %v1783_v31 }
 0x8b9   : > { %2010 = vmatmul.mubr.bf16.vlgmr.msra.gmra.mrb[28].mxu0 %v1782_v33  ;;  %2533 = vmatmul.mubr.bf16.vlgmr.msra.gmra.mrb[28].mxu1 %v1784_v34 }
 0x98c   : > { %v2413_v35 = vpop.f32.mrb[28].mxu0  ;;  %v2051_v25 = vpop.f32.mrb[28].mxu1 }
 0x98d   : > { %v2414_v36 = vpop.f32.mrb[29].mxu0  ;;  %v2534_v37 = vpop.f32.mrb[29].mxu1 }
 0x98e   : > { %v2415_v38 = vadd.f32 %v2414_v36, %v2413_v35  ;;  %v2416_v39 = vpop.f32.mrb[30].mxu0  ;;  %v2054_v40 = vpop.f32.mrb[30].mxu1  ;;  %2062 = sbr.rel (%p2354_p5) target bundleno = 2453 (0x995), region = 84 }
 0x98f   : > { %v2417_v42 = vpop.f32.mrb[31].mxu0  ;;  %v2535_v43 = vpop.f32.mrb[31].mxu1 }
 0x990   : > { %v2052_v44 = vadd.f32 %v2415_v38, %v2051_v25 }
 0x992   : > { %v2057_v45 = vadd.f32 %v2052_v44, %v3566_v55 }
 0x994   : > { %2058 = vst [vmem:[#allocation2] sm:$0xff] %v2057_v45  ;;  %2063 = vst [vmem:[#allocation13] sm:$0xff] (!%p2354_p5), %v2057_v45 }
 0x995 PF: > { %p2589_p1 = scmp.eq.s32.totalorder %s3139_s9, 3  ;;  %s3074_s18 = smov [#allocation13]  }
 0x996   : > { %s2071_s16 = sshll.u32 %s3074_s18, 4  ;;  %s2072_s16 = int_to_ptr.vmem [resolvable:$true] %s2071_s16 }
 0x997   : > { %s2982_s13 = scalar_lea.vmem %s2072_s16, 128  ;;  %p2989_p10 = scmp.lt.s32.totalorder %s2072_s16, %s2072_s16 }
 0x998   : > { %p2983_p8 = scmp.ne.s32.totalorder %s2072_s16, %s2982_s13  ;;  %p2990_p9 = scmp.lt.s32.totalorder %s2982_s13, %s2982_s13 }
 0x99a   : > { %p2984_p11 = pnand %p2983_p8, %p2589_p1  ;;  %p2991_p13 = por %p2990_p9, %p2989_p10 }
 0x99c   : > { %p2985_p3 = pneg %p2984_p11 }
 0x99e   : > { %p2992_p2 = pnand %p2991_p13, %p2985_p3 }
 0x9a0   : > { %2995 = shalt.err (!%p2992_p2)
}
 0x9a1   : > { %s2996_s4 = scalar_lea.hbm %s3693_s8, 128 }
 0x9a2   : > { %p2997_p4 = scmp.ne.s32.totalorder %s3693_s8, %s2996_s4  ;;  %p3002_p7 = scmp.lt.u32.totalorder %s2996_s4, %s3693_s8 }
 0x9a4   : > { %p2998_p6 = pnand %p2997_p4, %p2589_p1 }
 0x9a6   : > { %p2999_p0 = pneg %p2998_p6 }
 0x9a8   : > { %p3004_p12 = pnand %p3002_p7, %p2999_p0 }
 0x9aa   : > { %3007 = shalt.err (!%p3004_p12)
}
 0x9ab   : > { %2561 = dma.vmem_to_hbm [thread:$0]  (%p2589_p1), %s2072_s16, 128, %s3693_s8, [#allocation6]  }
 0x9ac   : > { %3037 = dma.done.wait (%p2589_p1), [#allocation6], 128  }
 0x9ad   : > { %3039 = vsyncadd (%p2589_p1), [#allocation6], 4294967168 }
 0x9ae PF: > { %s3736_s19 = sld [smem:[#allocation18_spill]]  ;;  %s3737_s29 = sld [smem:[#allocation19_spill]] }
 0x9af   : > { %p18_p5 = scmp.ge.s32.totalorder %s3142_s10, 6   ;;  %s3738_s27 = smov %s3046_s28 }
 0x9b0   : > { %s3740_s30 = smov %s3142_s10 }
 0x9b1   :  { %20 = sbr.rel (!%p18_p5) target bundleno = 8 (0x8), region = 143 }
 0x9b4   : > { %s3739_s28 = smov %s3736_s19 }
 0x9b8   :  { %2084 = vsyncpa [#allocation5], 1 }
 0x9b9   :  { %2086 = vsyncpa [#allocation5 + $0x1], 1 }
 0x9ba   :  { %2087 = vsyncpa [#allocation8], 1 }
 0x9bb   :  { %2088 = vsyncpa [#allocation6], 1 }
 0x9bc   :  { %2090 = vsyncpa [#allocation6 + $0x1], 1 }

</bundles_post_ra>
